<compile_context>
chip_gen: v7x
topology: tpu7x:2x2x1
jax: 0.10.0
libtpu: 0.0.40
codegen_flags: <defaults>
</compile_context>

<pallas_src>
import functools

import jax
import jax.numpy as jnp
from jax.experimental import pallas as pl
from jax.experimental.pallas import tpu as pltpu


# ----------------------------------------------------------------------------
# Activations (match PyTorch defaults: ELU alpha=1.0, LeakyReLU slope=0.01)
# ----------------------------------------------------------------------------
def _activation(h, kind):
    if kind == "relu":
        return jnp.maximum(h, 0.0)
    if kind == "elu":
        return jnp.where(h > 0, h, jnp.expm1(h))
    if kind == "leakyrelu":
        return jnp.where(h >= 0, h, 0.01 * h)
    raise ValueError(f"unsupported activation: {kind}")


# ----------------------------------------------------------------------------
# Fused Pallas kernel: the whole MLP for one tile of batch rows
# ----------------------------------------------------------------------------
def _encoder_kernel(x_ref, *refs, num_layers, activation):
    """refs = (w_0, b_0, w_1, b_1, ..., w_{L-1}, b_{L-1}, out_ref).

    Weights (bf16) and biases (f32) are fully VMEM-resident; all layer
    intermediates live only in VMEM/vregs.
    """
    out_ref = refs[-1]
    h = x_ref[...]                                            # [TILE_M, D_in] f32
    for i in range(num_layers):
        w = refs[2 * i][...]                                  # [D_i, D_{i+1}] bf16
        b = refs[2 * i + 1][...]                              # [1,   D_{i+1}] f32
        acc = jnp.dot(h.astype(jnp.bfloat16), w,              # bf16 MXU, f32 accum
                      preferred_element_type=jnp.float32)
        h = _activation(acc + b, activation)                  # bias + act in f32
    out_ref[...] = h.astype(out_ref.dtype)


# ----------------------------------------------------------------------------
# Helpers
# ----------------------------------------------------------------------------
def _round_up(n, m):
    return ((n + m - 1) // m) * m


def _choose_tile_m(B):
    if B <= 128:
        return _round_up(B, 8)
    # Large batches: up to 512 rows/tile, but never a single giant tile --
    # keep >=2 grid steps so both v7x TensorCores get work ("parallel" axis).
    return min(512, _round_up(-(-B // 2), 128))


def _vmem_limit_bytes(TILE_M, D_in, D_out, ws, bs, w_bufs):
    need = 2 * TILE_M * D_in * 4                      # double-buffered f32 input tile
    need += 2 * TILE_M * D_out * 4                    # double-buffered f32 output tile
    need += w_bufs * sum(int(w.size) * w.dtype.itemsize for w in ws)
    need += w_bufs * sum(int(b.size) * b.dtype.itemsize for b in bs)
    widest = max([D_out] + [int(w.shape[1]) for w in ws])
    need += 4 * TILE_M * widest * 4                   # intermediates / compiler headroom
    return int(min(max(need + (4 << 20), 32 << 20), 128 << 20))


def prepare_encoder_params(params):
    """One-time parameter prep: transpose to [in,out] and cast weights to bf16."""
    ws = [jnp.transpose(w).astype(jnp.bfloat16) for w in params["weights"]]
    bs = [jnp.asarray(b, jnp.float32).reshape(1, -1) for b in params["biases"]]
    return {"weights_t": ws, "biases": bs}


def _fused_mlp(f, ws, bs, act, TILE_M, *, single_buffer_weights):
    B, D_in = f.shape
    D_out = int(ws[-1].shape[1])
    num_layers = len(ws)

    w_mode = pl.Buffered(1) if single_buffer_weights else None
    w_bufs = 1 if single_buffer_weights else 2

    in_specs = [pl.BlockSpec((TILE_M, D_in), lambda i: (i, 0))]
    args = [f]
    for w, b in zip(ws, bs):
        # Constant blocks across the grid -> single-buffered (no re-DMA either way).
        in_specs.append(pl.BlockSpec(w.shape, lambda i: (0, 0), pipeline_mode=w_mode))
        in_specs.append(pl.BlockSpec(b.shape, lambda i: (0, 0), pipeline_mode=w_mode))
        args.extend([w, b])

    kern = functools.partial(_encoder_kernel, num_layers=num_layers, activation=act)
    return pl.pallas_call(
        kern,
        out_shape=jax.ShapeDtypeStruct((B, D_out), jnp.float32),
        grid=(pl.cdiv(B, TILE_M),),                   # ragged last block clipped by Pallas
        in_specs=in_specs,
        out_specs=pl.BlockSpec((TILE_M, D_out), lambda i: (i, 0)),
        compiler_params=pltpu.CompilerParams(
            dimension_semantics=("parallel",),
            vmem_limit_bytes=_vmem_limit_bytes(TILE_M, D_in, D_out, ws, bs, w_bufs),
        ),
    )(*args)


# ----------------------------------------------------------------------------
# Wrapper: flatten -> fused kernel -> unflatten -> (mean, logstd)
# ----------------------------------------------------------------------------
def simple_encoder_forward(x, params, *, num_latent_channels, s, activation="relu"):
    """Pallas forward of SimpleEncoder.

    x:      [B, ...] (flattened to hlist[0] features per row)
    params: either raw {"weights": [out,in] PyTorch-layout, "biases": [out]}
            or the output of prepare_encoder_params() (preferred: prep once).
    returns (mean, logstd), each [B, num_latent_channels, s, s]
    """
    prep = params if "weights_t" in params else prepare_encoder_params(params)
    ws, bs = prep["weights_t"], prep["biases"]
    act = activation.lower()

    B = x.shape[0]
    f = x.reshape(B, -1).astype(jnp.float32)                  # nn.Flatten
    assert f.shape[1] == ws[0].shape[0], "flattened input must match hlist[0]"
    D_out = int(ws[-1].shape[1])
    assert D_out == 2 * num_latent_channels * s * s, "hlist[-1] must equal 2*C*s*s"

    TILE_M = _choose_tile_m(B)
    try:
        out = _fused_mlp(f, ws, bs, act, TILE_M, single_buffer_weights=True)
    except Exception:  # pragma: no cover - jax build without pipeline_mode support
        out = _fused_mlp(f, ws, bs, act, TILE_M, single_buffer_weights=False)

    # nn.Unflatten(dim=1, (2, C, s, s)) then split along the size-2 axis.
    fo = out.reshape(B, 2, num_latent_channels, s, s)
    return fo[:, 0], fo[:, 1]                                 # (mean, logstd)


# ----------------------------------------------------------------------------
# Pure-JAX reference (HIGHEST precision f32) for the correctness check
# ----------------------------------------------------------------------------
def reference_forward(x, params, *, num_latent_channels, s, activation="relu"):
    f = x.reshape(x.shape[0], -1).astype(jnp.float32)
    for w, b in zip(params["weights"], params["biases"]):
        f = jnp.dot(f, w.T, precision=jax.lax.Precision.HIGHEST) + b
        f = _activation(f, activation.lower())
    f = f.reshape(x.shape[0], 2, num_latent_channels, s, s)
    return f[:, 0], f[:, 1]


# ----------------------------------------------------------------------------
if __name__ == "__main__":
    key = jax.random.PRNGKey(0)
    kx, k1, k2, k3, k4 = jax.random.split(key, 5)

    # hlist = [1024, 256, 128]; input [2, 4, 16, 16] flattens to 1024 features;
    # output unflattens to (2, num_latent_channels=4, s=4, s=4): 2*4*4*4 = 128.
    hlist = [1024, 256, 128]
    C, S = 4, 4
    params = {
        "weights": [
            0.05 * jax.random.normal(k1, (hlist[1], hlist[0]), jnp.float32),
            0.05 * jax.random.normal(k2, (hlist[2], hlist[1]), jnp.float32),
        ],
        "biases": [
            0.05 * jax.random.normal(k3, (hlist[1],), jnp.float32),
            0.05 * jax.random.normal(k4, (hlist[2],), jnp.float32),
        ],
    }
    x = jax.random.normal(kx, (2, 4, 16, 16), jnp.float32)

    # One-time parameter prep (transpose + bf16 cast), reused across calls.
    prepped = prepare_encoder_params(params)

    for act in ("ReLU", "ELU"):
        mean, logstd = jax.block_until_ready(
            simple_encoder_forward(x, prepped, num_latent_channels=C, s=S,
                                   activation=act))
        assert mean.shape == (2, C, S, S), mean.shape
        assert logstd.shape == (2, C, S, S), logstd.shape

        rmean, rlogstd = reference_forward(x, params, num_latent_channels=C, s=S,
                                           activation=act)
        for got, ref in ((mean, rmean), (logstd, rlogstd)):
            rel_err = float(jnp.max(jnp.abs(got - ref)) / (jnp.max(jnp.abs(ref)) + 1e-6))
            # bf16 MXU operands with f32 accumulation -> ~1e-3..1e-2 rel error.
            assert rel_err < 2e-2, f"{act}: mismatch vs reference: rel_err={rel_err}"

    print("KERNEL_OK")
</pallas_src>

<mosaic_0001>
module attributes {stable_mosaic.version = 11 : i64} {
  func.func @_encoder_kernel(%arg0: i32, %arg1: memref<8x1024xf32, #tpu.memory_space<vmem>>, %arg2: memref<1024x256xbf16, #tpu.memory_space<vmem>>, %arg3: memref<1x256xf32, #tpu.memory_space<vmem>>, %arg4: memref<256x128xbf16, #tpu.memory_space<vmem>>, %arg5: memref<1x128xf32, #tpu.memory_space<vmem>>, %arg6: memref<8x128xf32, #tpu.memory_space<vmem>>) attributes {dimension_semantics = [#tpu.dimension_semantics<parallel>], iteration_bounds = array<i64: 1>, scalar_prefetch = 0 : i64, scratch_operands = 0 : i64, tpu.core_type = #tpu.core_type<tc>, window_params = [{transform_indices = @transform_0, window_bounds = array<i64: 8, 1024>}, {pipeline_mode = #tpu.pipeline_mode<synchronous>, transform_indices = @transform_1, window_bounds = array<i64: 1024, 256>}, {pipeline_mode = #tpu.pipeline_mode<synchronous>, transform_indices = @transform_2, window_bounds = array<i64: 1, 256>}, {pipeline_mode = #tpu.pipeline_mode<synchronous>, transform_indices = @transform_3, window_bounds = array<i64: 256, 128>}, {pipeline_mode = #tpu.pipeline_mode<synchronous>, transform_indices = @transform_4, window_bounds = array<i64: 1, 128>}, {transform_indices = @transform_5, window_bounds = array<i64: 8, 128>}]} {
    %c0 = arith.constant 0 : index
    %c0_0 = arith.constant 0 : index
    %0 = vector.load %arg1[%c0, %c0_0] : memref<8x1024xf32, #tpu.memory_space<vmem>>, vector<8x1024xf32>
    %c0_1 = arith.constant 0 : index
    %c0_2 = arith.constant 0 : index
    %1 = vector.load %arg2[%c0_1, %c0_2] : memref<1024x256xbf16, #tpu.memory_space<vmem>>, vector<1024x256xbf16>
    %c0_3 = arith.constant 0 : index
    %c0_4 = arith.constant 0 : index
    %2 = vector.load %arg3[%c0_3, %c0_4] : memref<1x256xf32, #tpu.memory_space<vmem>>, vector<1x256xf32>
    %3 = arith.truncf %0 : vector<8x1024xf32> to vector<8x1024xbf16>
    %cst = arith.constant dense<0.000000e+00> : vector<8x256xf32>
    %4 = tpu.matmul %3, %1, %cst {dimension_numbers = #tpu.dot_dimension_numbers<[1], [0], [0], [1], [0, 0, 1, 1], [], []>} : vector<8x1024xbf16>, vector<1024x256xbf16>, vector<8x256xf32> -> vector<8x256xf32>
    %5 = vector.broadcast %2 : vector<1x256xf32> to vector<8x256xf32>
    %6 = arith.addf %4, %5 : vector<8x256xf32>
    %cst_5 = arith.constant 0.000000e+00 : f32
    %7 = vector.broadcast %cst_5 : f32 to vector<8x256xf32>
    %8 = arith.maximumf %6, %7 : vector<8x256xf32>
    %c0_6 = arith.constant 0 : index
    %c0_7 = arith.constant 0 : index
    %9 = vector.load %arg4[%c0_6, %c0_7] : memref<256x128xbf16, #tpu.memory_space<vmem>>, vector<256x128xbf16>
    %c0_8 = arith.constant 0 : index
    %c0_9 = arith.constant 0 : index
    %10 = vector.load %arg5[%c0_8, %c0_9] : memref<1x128xf32, #tpu.memory_space<vmem>>, vector<1x128xf32>
    %11 = arith.truncf %8 : vector<8x256xf32> to vector<8x256xbf16>
    %cst_10 = arith.constant dense<0.000000e+00> : vector<8x128xf32>
    %12 = tpu.matmul %11, %9, %cst_10 {dimension_numbers = #tpu.dot_dimension_numbers<[1], [0], [0], [1], [0, 0, 1, 1], [], []>} : vector<8x256xbf16>, vector<256x128xbf16>, vector<8x128xf32> -> vector<8x128xf32>
    %13 = vector.broadcast %10 : vector<1x128xf32> to vector<8x128xf32>
    %14 = arith.addf %12, %13 : vector<8x128xf32>
    %cst_11 = arith.constant 0.000000e+00 : f32
    %15 = vector.broadcast %cst_11 : f32 to vector<8x128xf32>
    %16 = arith.maximumf %14, %15 : vector<8x128xf32>
    %c0_12 = arith.constant 0 : index
    %c0_13 = arith.constant 0 : index
    %17 = vector.load %arg6[%c0_12, %c0_13] : memref<8x128xf32, #tpu.memory_space<vmem>>, vector<8x128xf32>
    tpu.vector_store %arg6[%c0_12, %c0_13], %16 {strides = array<i32>} : memref<8x128xf32, #tpu.memory_space<vmem>>, vector<8x128xf32>,
    return
  }
  func.func @transform_0(%arg0: i32) -> (i32, i32) {
    %c0_i32 = arith.constant 0 : i32
    %c0_i32_0 = arith.constant 0 : i32
    return %arg0, %c0_i32 : i32, i32
  }
  func.func @transform_1(%arg0: i32) -> (i32, i32) {
    %c0_i32 = arith.constant 0 : i32
    %c0_i32_0 = arith.constant 0 : i32
    %c0_i32_1 = arith.constant 0 : i32
    return %c0_i32, %c0_i32_0 : i32, i32
  }
  func.func @transform_2(%arg0: i32) -> (i32, i32) {
    %c0_i32 = arith.constant 0 : i32
    %c0_i32_0 = arith.constant 0 : i32
    %c0_i32_1 = arith.constant 0 : i32
    return %c0_i32, %c0_i32_0 : i32, i32
  }
  func.func @transform_3(%arg0: i32) -> (i32, i32) {
    %c0_i32 = arith.constant 0 : i32
    %c0_i32_0 = arith.constant 0 : i32
    %c0_i32_1 = arith.constant 0 : i32
    return %c0_i32, %c0_i32_0 : i32, i32
  }
  func.func @transform_4(%arg0: i32) -> (i32, i32) {
    %c0_i32 = arith.constant 0 : i32
    %c0_i32_0 = arith.constant 0 : i32
    %c0_i32_1 = arith.constant 0 : i32
    return %c0_i32, %c0_i32_0 : i32, i32
  }
  func.func @transform_5(%arg0: i32) -> (i32, i32) {
    %c0_i32 = arith.constant 0 : i32
    %c0_i32_0 = arith.constant 0 : i32
    return %arg0, %c0_i32 : i32, i32
  }
}

module attributes {stable_mosaic.version = 11 : i64} {
  func.func @_encoder_kernel(%arg0: i32, %arg1: memref<8x1024xf32, #tpu.memory_space<vmem>>, %arg2: memref<1024x256xbf16, #tpu.memory_space<vmem>>, %arg3: memref<1x256xf32, #tpu.memory_space<vmem>>, %arg4: memref<256x128xbf16, #tpu.memory_space<vmem>>, %arg5: memref<1x128xf32, #tpu.memory_space<vmem>>, %arg6: memref<8x128xf32, #tpu.memory_space<vmem>>) attributes {dimension_semantics = [#tpu.dimension_semantics<parallel>], iteration_bounds = array<i64: 1>, scalar_prefetch = 0 : i64, scratch_operands = 0 : i64, tpu.core_type = #tpu.core_type<tc>, window_params = [{transform_indices = @transform_0, window_bounds = array<i64: 8, 1024>}, {pipeline_mode = #tpu.pipeline_mode<synchronous>, transform_indices = @transform_1, window_bounds = array<i64: 1024, 256>}, {pipeline_mode = #tpu.pipeline_mode<synchronous>, transform_indices = @transform_2, window_bounds = array<i64: 1, 256>}, {pipeline_mode = #tpu.pipeline_mode<synchronous>, transform_indices = @transform_3, window_bounds = array<i64: 256, 128>}, {pipeline_mode = #tpu.pipeline_mode<synchronous>, transform_indices = @transform_4, window_bounds = array<i64: 1, 128>}, {transform_indices = @transform_5, window_bounds = array<i64: 8, 128>}]} {
    %c0 = arith.constant 0 : index
    %c0_0 = arith.constant 0 : index
    %0 = vector.load %arg1[%c0, %c0_0] : memref<8x1024xf32, #tpu.memory_space<vmem>>, vector<8x1024xf32>
    %c0_1 = arith.constant 0 : index
    %c0_2 = arith.constant 0 : index
    %1 = vector.load %arg2[%c0_1, %c0_2] : memref<1024x256xbf16, #tpu.memory_space<vmem>>, vector<1024x256xbf16>
    %c0_3 = arith.constant 0 : index
    %c0_4 = arith.constant 0 : index
    %2 = vector.load %arg3[%c0_3, %c0_4] : memref<1x256xf32, #tpu.memory_space<vmem>>, vector<1x256xf32>
    %3 = arith.truncf %0 : vector<8x1024xf32> to vector<8x1024xbf16>
    %cst = arith.constant dense<0.000000e+00> : vector<8x256xf32>
    %4 = tpu.matmul %3, %1, %cst {dimension_numbers = #tpu.dot_dimension_numbers<[1], [0], [0], [1], [0, 0, 1, 1], [], []>} : vector<8x1024xbf16>, vector<1024x256xbf16>, vector<8x256xf32> -> vector<8x256xf32>
    %5 = vector.broadcast %2 : vector<1x256xf32> to vector<8x256xf32>
    %6 = arith.addf %4, %5 : vector<8x256xf32>
    %cst_5 = arith.constant 0.000000e+00 : f32
    %7 = vector.broadcast %cst_5 : f32 to vector<8x256xf32>
    %8 = arith.maximumf %6, %7 : vector<8x256xf32>
    %c0_6 = arith.constant 0 : index
    %c0_7 = arith.constant 0 : index
    %9 = vector.load %arg4[%c0_6, %c0_7] : memref<256x128xbf16, #tpu.memory_space<vmem>>, vector<256x128xbf16>
    %c0_8 = arith.constant 0 : index
    %c0_9 = arith.constant 0 : index
    %10 = vector.load %arg5[%c0_8, %c0_9] : memref<1x128xf32, #tpu.memory_space<vmem>>, vector<1x128xf32>
    %11 = arith.truncf %8 : vector<8x256xf32> to vector<8x256xbf16>
    %cst_10 = arith.constant dense<0.000000e+00> : vector<8x128xf32>
    %12 = tpu.matmul %11, %9, %cst_10 {dimension_numbers = #tpu.dot_dimension_numbers<[1], [0], [0], [1], [0, 0, 1, 1], [], []>} : vector<8x256xbf16>, vector<256x128xbf16>, vector<8x128xf32> -> vector<8x128xf32>
    %13 = vector.broadcast %10 : vector<1x128xf32> to vector<8x128xf32>
    %14 = arith.addf %12, %13 : vector<8x128xf32>
    %cst_11 = arith.constant 0.000000e+00 : f32
    %15 = vector.broadcast %cst_11 : f32 to vector<8x128xf32>
    %16 = arith.maximumf %14, %15 : vector<8x128xf32>
    %c0_12 = arith.constant 0 : index
    %c0_13 = arith.constant 0 : index
    %17 = vector.load %arg6[%c0_12, %c0_13] : memref<8x128xf32, #tpu.memory_space<vmem>>, vector<8x128xf32>
    tpu.vector_store %arg6[%c0_12, %c0_13], %16 {strides = array<i32>} : memref<8x128xf32, #tpu.memory_space<vmem>>, vector<8x128xf32>,
    return
  }
  func.func @transform_0(%arg0: i32) -> (i32, i32) {
    %c0_i32 = arith.constant 0 : i32
    %c0_i32_0 = arith.constant 0 : i32
    return %arg0, %c0_i32 : i32, i32
  }
  func.func @transform_1(%arg0: i32) -> (i32, i32) {
    %c0_i32 = arith.constant 0 : i32
    %c0_i32_0 = arith.constant 0 : i32
    %c0_i32_1 = arith.constant 0 : i32
    return %c0_i32, %c0_i32_0 : i32, i32
  }
  func.func @transform_2(%arg0: i32) -> (i32, i32) {
    %c0_i32 = arith.constant 0 : i32
    %c0_i32_0 = arith.constant 0 : i32
    %c0_i32_1 = arith.constant 0 : i32
    return %c0_i32, %c0_i32_0 : i32, i32
  }
  func.func @transform_3(%arg0: i32) -> (i32, i32) {
    %c0_i32 = arith.constant 0 : i32
    %c0_i32_0 = arith.constant 0 : i32
    %c0_i32_1 = arith.constant 0 : i32
    return %c0_i32, %c0_i32_0 : i32, i32
  }
  func.func @transform_4(%arg0: i32) -> (i32, i32) {
    %c0_i32 = arith.constant 0 : i32
    %c0_i32_0 = arith.constant 0 : i32
    %c0_i32_1 = arith.constant 0 : i32
    return %c0_i32, %c0_i32_0 : i32, i32
  }
  func.func @transform_5(%arg0: i32) -> (i32, i32) {
    %c0_i32 = arith.constant 0 : i32
    %c0_i32_0 = arith.constant 0 : i32
    return %arg0, %c0_i32 : i32, i32
  }
}

</mosaic_0001>

<bundles_post_ra>
// kernel: tpu_custom_call.1
= control target key start
LH: loop header
LB: loop body
LE: loop exit
PB: predicated region body
PF: predicated region fallthrough
CT: control target
= control target key end

     0   :  { %10 = vsyncpa [#allocation3], 0  ;;  %s1934_s0 = inlined_call_operand.hbm [shape: f32[2,1024], index: 0, kind: input, shape index: {}]   ;;  %s1935_s1 = inlined_call_operand.hbm [shape: bf16[1024,256], index: 1, kind: input, shape index: {}]   ;;  %s1936_s2 = inlined_call_operand.vmem [shape: f32[1,256], index: 2, kind: input, shape index: {}]   ;;  %s1937_s3 = inlined_call_operand.hbm [shape: bf16[256,128], index: 3, kind: input, shape index: {}]   ;;  %s1938_s4 = inlined_call_operand.vmem [shape: f32[1,128], index: 4, kind: input, shape index: {}]   ;;  %s1939_s5 = inlined_call_operand.hbm [shape: f32[2,128], index: 5, kind: output, shape index: {}]  }
   0x1   :  { %11 = vsyncpa [#allocation6], 0 }
   0x2   :  { %12 = vsyncpa [#allocation4], 0 }
   0x3   :  { %17 = vsyncadd [#allocation3], 768  ;;  %s1816_s18 = smov [#allocation5]   ;;  %s1722_s22 = scalar_lea.hbm %s1935_s1, 16384 }
   0x4   :  { %s30_s19 = sshll.u32 %s1816_s18, 4  ;;  %p1723_p0 = scmp.ne.s32.totalorder %s1935_s1, %s1722_s22  ;;  %s31_s19 = int_to_ptr.vmem [resolvable:$true] %s30_s19 }
   0x5   :  { %p1726_p1 = scmp.lt.u32.totalorder %s1722_s22, %s1935_s1 }
   0x7   :  { %p1728_p2 = pnand %p1726_p1, %p1723_p0 }
   0x9   :  { %1731 = shalt.err (!%p1728_p2)
}
   0xa   :  { %s1732_s27 = scalar_lea.vmem %s31_s19, 16384  ;;  %p1737_p4 = scmp.lt.s32.totalorder %s31_s19, %s31_s19 }
   0xb   :  { %p1733_p3 = scmp.ne.s32.totalorder %s31_s19, %s1732_s27  ;;  %p1738_p5 = scmp.lt.s32.totalorder %s1732_s27, %s1732_s27 }
   0xd   :  { %p1739_p6 = por %p1738_p5, %p1737_p4 }
   0xf   :  { %p1740_p7 = pnand %p1739_p6, %p1733_p3 }
  0x11   :  { %1743 = shalt.err (!%p1740_p7)
}
  0x12   :  { %s1817_s28 = smov 128   ;;  %s1818_s29 = smov 8  }
  0x13   :  { %36 = dma.hbm_to_vmem [thread:$0]  %s1935_s1, 16384, %s31_s19, [#allocation6], %s1817_s28, %s1817_s28, %s1818_s29  }
  0x14   :  { %s1819_s7 = smov [#allocation2]   ;;  %s1744_s11 = scalar_lea.hbm %s1934_s0, 256 }
  0x15   :  { %s18_s8 = sshll.u32 %s1819_s7, 4  ;;  %p1745_p8 = scmp.ne.s32.totalorder %s1934_s0, %s1744_s11  ;;  %s19_s8 = int_to_ptr.vmem [resolvable:$true] %s18_s8 }
  0x16   :  { %p1748_p9 = scmp.lt.u32.totalorder %s1744_s11, %s1934_s0 }
  0x18   :  { %p1750_p10 = pnand %p1748_p9, %p1745_p8 }
  0x1a   :  { %1753 = shalt.err (!%p1750_p10)
}
  0x1b   :  { %s1754_s16 = scalar_lea.vmem %s19_s8, 256  ;;  %s1758_s1 = scalar_lea.vmem %s19_s8, 1024 }
  0x1c   :  { %p1755_p11 = scmp.ne.s32.totalorder %s19_s8, %s1754_s16  ;;  %p1759_p12 = scmp.lt.s32.totalorder %s19_s8, %s19_s8 }
  0x1d   :  { %p1760_p13 = scmp.lt.s32.totalorder %s1758_s1, %s1754_s16 }
  0x1f   :  { %p1761_p0 = por %p1760_p13, %p1759_p12 }
  0x21   :  { %p1762_p1 = pnand %p1761_p0, %p1755_p11 }
  0x23   :  { %1765 = shalt.err (!%p1762_p1)
}
  0x24   :  { %s1820_s17 = smov 256   ;;  %s1821_s18 = smov 16  }
  0x25   :  { %24 = dma.hbm_to_vmem [thread:$0]  %s1934_s0, 256, %s19_s8, [#allocation3], %s1820_s17, %s1820_s17, %s1821_s18  }
  0x26   :  { %s1822_s21 = smov [#allocation7]   ;;  %s1766_s25 = scalar_lea.hbm %s1937_s3, 2048 }
  0x27   :  { %s44_s22 = sshll.u32 %s1822_s21, 4  ;;  %p1767_p2 = scmp.ne.s32.totalorder %s1937_s3, %s1766_s25  ;;  %s45_s22 = int_to_ptr.vmem [resolvable:$true] %s44_s22 }
  0x28   :  { %p1770_p3 = scmp.lt.u32.totalorder %s1766_s25, %s1937_s3 }
  0x2a   :  { %p1772_p4 = pnand %p1770_p3, %p1767_p2 }
  0x2c   :  { %1775 = shalt.err (!%p1772_p4)
}
  0x2d   :  { %s1776_s30 = scalar_lea.vmem %s45_s22, 2048  ;;  %p1781_p6 = scmp.lt.s32.totalorder %s45_s22, %s45_s22 }
  0x2e   :  { %p1777_p5 = scmp.ne.s32.totalorder %s45_s22, %s1776_s30  ;;  %p1782_p7 = scmp.lt.s32.totalorder %s1776_s30, %s1776_s30 }
  0x30   :  { %p1783_p8 = por %p1782_p7, %p1781_p6 }
  0x32   :  { %p1784_p9 = pnand %p1783_p8, %p1777_p5 }
  0x34   :  { %1787 = shalt.err (!%p1784_p9)
}
  0x35   :  { %s1823_s0 = smov 64   ;;  %s1824_s6 = smov 4  }
  0x36   :  { %50 = dma.hbm_to_vmem [thread:$0]  %s1937_s3, 2048, %s45_s22, [#allocation6], %s1823_s0, %s1823_s0, %s1824_s6  }
  0x37   :  { %1810 = dma.done.wait [#allocation3], 1024  }
  0x38   :  { %1811 = vsyncadd [#allocation3], 4294966272 }
  0x39   :  { %1812 = dma.done.wait [#allocation6], 18432  }
  0x3a   :  { %1813 = vsyncadd [#allocation6], 4294948864  ;;  %v1502_v0 = vld [vmem:[#allocation5 + $0x4] ss:$8 sps:$4 sm:$0xff]   ;;  %v1506_v2 = vld [vmem:[#allocation5] ss:$8 sps:$4 sm:$0xff]   ;;  %v215_v40 = vlaneseq }
  0x3b   :  { %v1504_v1 = vld [vmem:[#allocation5 + $0x204] ss:$8 sps:$4 sm:$0xff]   ;;  %947 = vmatprep.subr.bf16.mxu1 %v1502_v0  ;;  %v1507_v3 = vld [vmem:[#allocation5 + $0x200] ss:$8 sps:$4 sm:$0xff]   ;;  %v1508_v4 = vld [vmem:[#allocation5 + $0x14] ss:$8 sps:$4 sm:$0xff]  }
  0x3c   :  { %1029 = vmatprep.subr.bf16.mxu0 %v1504_v1  ;;  %948 = vmatpush1.bf16.msra.mxu1 %v1506_v2  ;;  %v1510_v5 = vld [vmem:[#allocation5 + $0x214] ss:$8 sps:$4 sm:$0xff]   ;;  %v1512_v6 = vld [vmem:[#allocation5 + $0x10] ss:$8 sps:$4 sm:$0xff]   ;;  %v1514_v8 = vld [vmem:[#allocation5 + $0x24] ss:$8 sps:$4 sm:$0xff]  }
  0x3d   :  { %1030 = vmatpush1.bf16.msra.mxu0 %v1507_v3  ;;  %949 = vmatprep.subr.bf16.mxu1 %v1508_v4  ;;  %v1513_v7 = vld [vmem:[#allocation5 + $0x210] ss:$8 sps:$4 sm:$0xff]   ;;  %v1516_v9 = vld [vmem:[#allocation5 + $0x224] ss:$8 sps:$4 sm:$0xff]   ;;  %v1518_v10 = vld [vmem:[#allocation5 + $0x20] ss:$8 sps:$4 sm:$0xff]  }
  0x3e   :  { %1031 = vmatprep.subr.bf16.mxu0 %v1510_v5  ;;  %v1519_v11 = vld [vmem:[#allocation5 + $0x220] ss:$8 sps:$4 sm:$0xff]   ;;  %v1520_v12 = vld [vmem:[#allocation5 + $0x34] ss:$8 sps:$4 sm:$0xff]   ;;  %v1524_v14 = vld [vmem:[#allocation5 + $0x30] ss:$8 sps:$4 sm:$0xff]  }
  0x3f   :  { %v1522_v13 = vld [vmem:[#allocation5 + $0x234] ss:$8 sps:$4 sm:$0xff]   ;;  %v1525_v15 = vld [vmem:[#allocation5 + $0x230] ss:$8 sps:$4 sm:$0xff]   ;;  %v1526_v16 = vld [vmem:[#allocation5 + $0x44] ss:$8 sps:$4 sm:$0xff]  }
  0x40   :  { %950 = vmatpush1.bf16.msra.mxu1 %v1512_v6  ;;  %v1528_v17 = vld [vmem:[#allocation5 + $0x244] ss:$8 sps:$4 sm:$0xff]   ;;  %v1530_v18 = vld [vmem:[#allocation5 + $0x40] ss:$8 sps:$4 sm:$0xff]   ;;  %v1532_v20 = vld [vmem:[#allocation5 + $0x54] ss:$8 sps:$4 sm:$0xff]  }
  0x41   :  { %1032 = vmatpush1.bf16.msra.mxu0 %v1513_v7  ;;  %951 = vmatprep.subr.bf16.mxu1 %v1514_v8  ;;  %v1531_v19 = vld [vmem:[#allocation5 + $0x240] ss:$8 sps:$4 sm:$0xff]   ;;  %v1534_v21 = vld [vmem:[#allocation5 + $0x254] ss:$8 sps:$4 sm:$0xff]   ;;  %v1536_v22 = vld [vmem:[#allocation5 + $0x50] ss:$8 sps:$4 sm:$0xff]  }
  0x42   :  { %1033 = vmatprep.subr.bf16.mxu0 %v1516_v9  ;;  %v1537_v23 = vld [vmem:[#allocation5 + $0x250] ss:$8 sps:$4 sm:$0xff]   ;;  %v1538_v24 = vld [vmem:[#allocation5 + $0x64] ss:$8 sps:$4 sm:$0xff]   ;;  %v1542_v26 = vld [vmem:[#allocation5 + $0x60] ss:$8 sps:$4 sm:$0xff]  }
  0x43   :  { %v1540_v25 = vld [vmem:[#allocation5 + $0x264] ss:$8 sps:$4 sm:$0xff]   ;;  %v1543_v27 = vld [vmem:[#allocation5 + $0x260] ss:$8 sps:$4 sm:$0xff]   ;;  %v1544_v28 = vld [vmem:[#allocation5 + $0x74] ss:$8 sps:$4 sm:$0xff]  }
  0x44   :  { %952 = vmatpush1.bf16.msra.mxu1 %v1518_v10  ;;  %v1546_v29 = vld [vmem:[#allocation5 + $0x274] ss:$8 sps:$4 sm:$0xff]   ;;  %v1548_v30 = vld [vmem:[#allocation5 + $0x70] ss:$8 sps:$4 sm:$0xff]   ;;  %v1550_v32 = vld [vmem:[#allocation5 + $0x84] ss:$8 sps:$4 sm:$0xff]  }
  0x45   :  { %1034 = vmatpush1.bf16.msra.mxu0 %v1519_v11  ;;  %953 = vmatprep.subr.bf16.mxu1 %v1520_v12  ;;  %v1549_v31 = vld [vmem:[#allocation5 + $0x270] ss:$8 sps:$4 sm:$0xff]   ;;  %v1552_v33 = vld [vmem:[#allocation5 + $0x284] ss:$8 sps:$4 sm:$0xff]   ;;  %v1554_v34 = vld [vmem:[#allocation5 + $0x80] ss:$8 sps:$4 sm:$0xff]  }
  0x46   :  { %1035 = vmatprep.subr.bf16.mxu0 %v1522_v13  ;;  %v1555_v35 = vld [vmem:[#allocation5 + $0x280] ss:$8 sps:$4 sm:$0xff]   ;;  %v1556_v36 = vld [vmem:[#allocation5 + $0x94] ss:$8 sps:$4 sm:$0xff]   ;;  %v1825_v38 = vmov 1983009808  }
  0x47   :  { %v1558_v37 = vld [vmem:[#allocation5 + $0x294] ss:$8 sps:$4 sm:$0xff]   ;;  %v213_v39 = vunpack.c.l.s4 %v1825_v38  ;;  %v1560_v41 = vld [vmem:[#allocation5 + $0x90] ss:$8 sps:$4 sm:$0xff]   ;;  %v1562_v43 = vld [vmem:[#allocation5 + $0xa4] ss:$8 sps:$4 sm:$0xff]  }
  0x48   :  { %954 = vmatpush1.bf16.msra.mxu1 %v1524_v14  ;;  %v1561_v42 = vld [vmem:[#allocation5 + $0x290] ss:$8 sps:$4 sm:$0xff]   ;;  %v1564_v44 = vld [vmem:[#allocation5 + $0x2a4] ss:$8 sps:$4 sm:$0xff]   ;;  %v1895_v46 = vshrl.u32 %v215_v40, 7 }
  0x49   :  { %1036 = vmatpush1.bf16.msra.mxu0 %v1525_v15  ;;  %955 = vmatprep.subr.bf16.mxu1 %v1526_v16  ;;  %v214_v45 = vunpack.c.0.s8 %v213_v39  ;;  %v1566_v47 = vld [vmem:[#allocation5 + $0xa0] ss:$8 sps:$4 sm:$0xff]   ;;  %v1568_v49 = vld [vmem:[#allocation5 + $0xb4] ss:$8 sps:$4 sm:$0xff]   ;;  %v1572_v51 = vld [vmem:[#allocation5 + $0xb0] ss:$8 sps:$4 sm:$0xff]  }
  0x4a   :  { %1037 = vmatprep.subr.bf16.mxu0 %v1528_v17  ;;  %v1567_v48 = vld [vmem:[#allocation5 + $0x2a0] ss:$8 sps:$4 sm:$0xff]   ;;  %v1570_v50 = vld [vmem:[#allocation5 + $0x2b4] ss:$8 sps:$4 sm:$0xff]   ;;  %v1573_v52 = vld [vmem:[#allocation5 + $0x2b0] ss:$8 sps:$4 sm:$0xff]  }
  0x4b   :  { %v217_v53 = vsub.s32 %v214_v45, %v1895_v46  ;;  %v1574_v54 = vld [vmem:[#allocation5 + $0xc4] ss:$8 sps:$4 sm:$0xff]   ;;  %v1598_v55 = vld [vmem:[#allocation2] ss:$16 sps:$4 sm:$0xff]   ;;  %v1580_v62 = vld [vmem:[#allocation5 + $0xd4] ss:$8 sps:$4 sm:$0xff]  }
  0x4c   :  { %956 = vmatpush1.bf16.msra.mxu1 %v1530_v18  ;;  %v1601_v56 = vld [vmem:[#allocation2 + $0x20] ss:$16 sps:$4 sm:$0xff]   ;;  %v1576_v57 = vld [vmem:[#allocation5 + $0x2c4] ss:$8 sps:$4 sm:$0xff]   ;;  %v1607_v0 = vld [vmem:[#allocation2 + $0x8] ss:$16 sps:$4 sm:$0xff]  }
  0x4d   :  { %1038 = vmatpush1.bf16.msra.mxu0 %v1531_v19  ;;  %957 = vmatprep.subr.bf16.mxu1 %v1532_v20  ;;  %v1578_v58 = vld [vmem:[#allocation5 + $0xc0] ss:$8 sps:$4 sm:$0xff]   ;;  %v218_v60 = vrot.slane %v1598_v55, %v217_v53  ;;  %v232_v61 = vrot.slane %v1601_v56, %v217_v53  ;;  %v1582_v2 = vld [vmem:[#allocation5 + $0x2d4] ss:$8 sps:$4 sm:$0xff]   ;;  %v1584_v3 = vld [vmem:[#allocation5 + $0xd0] ss:$8 sps:$4 sm:$0xff]   ;;  %v254_v6 = vrot.slane %v1607_v0, %v217_v53 }
  0x4e   :  { %1039 = vmatprep.subr.bf16.mxu0 %v1534_v21  ;;  %v1579_v59 = vld [vmem:[#allocation5 + $0x2c0] ss:$8 sps:$4 sm:$0xff]   ;;  %v1585_v4 = vld [vmem:[#allocation5 + $0x2d0] ss:$8 sps:$4 sm:$0xff]   ;;  %v1586_v8 = vld [vmem:[#allocation5 + $0xe4] ss:$8 sps:$4 sm:$0xff]  }
  0x4f   :  { %v241_v63 = vcombine.high %v218_v60, %v232_v61  ;;  %v1610_v1 = vld [vmem:[#allocation2 + $0x28] ss:$16 sps:$4 sm:$0xff]   ;;  %v1588_v9 = vld [vmem:[#allocation5 + $0x2e4] ss:$8 sps:$4 sm:$0xff]   ;;  %v1592_v18 = vld [vmem:[#allocation5 + $0xf4] ss:$8 sps:$4 sm:$0xff]  }
  0x50   :  { %958 = vmatpush1.bf16.msra.mxu1 %v1536_v22  ;;  %v268_v7 = vrot.slane %v1610_v1, %v217_v53  ;;  %v1600_v10 = vld [vmem:[#allocation2 + $0x4] ss:$16 sps:$4 sm:$0xff]   ;;  %v1609_v13 = vld [vmem:[#allocation2 + $0xc] ss:$16 sps:$4 sm:$0xff]   ;;  %v1590_v16 = vld [vmem:[#allocation5 + $0xe0] ss:$8 sps:$4 sm:$0xff]  }
  0x51   :  { %1040 = vmatpush1.bf16.msra.mxu0 %v1537_v23  ;;  %959 = vmatprep.subr.bf16.mxu1 %v1538_v24  ;;  %v289_v5 = vpack.c.bf16 %v241_v63, %v241_v63  ;;  %v1603_v12 = vld [vmem:[#allocation2 + $0x24] ss:$16 sps:$4 sm:$0xff]   ;;  %v1612_v14 = vld [vmem:[#allocation2 + $0x2c] ss:$16 sps:$4 sm:$0xff]   ;;  %v1591_v17 = vld [vmem:[#allocation5 + $0x2e0] ss:$8 sps:$4 sm:$0xff]   ;;  %v1898_v20 = vrot.slane %v1600_v10, %v217_v53  ;;  %v1902_v22 = vrot.slane %v1609_v13, %v217_v53 }
  0x52   :  { %1041 = vmatprep.subr.bf16.mxu0 %v1540_v25  ;;  %v277_v11 = vcombine.high %v254_v6, %v268_v7  ;;  %v1594_v19 = vld [vmem:[#allocation5 + $0x2f4] ss:$8 sps:$4 sm:$0xff]   ;;  %v1900_v21 = vrot.slane %v1603_v12, %v217_v53  ;;  %v1904_v23 = vrot.slane %v1612_v14, %v217_v53  ;;  %v1596_v24 = vld [vmem:[#allocation5 + $0xf0] ss:$8 sps:$4 sm:$0xff]   ;;  %v1625_v45 = vld [vmem:[#allocation5 + $0x320] ss:$8 sps:$4 sm:$0xff]  }
  0x53   :  { %979 = vmatprep.mubr.bf16.mxu1 %v289_v5  ;;  %v1597_v25 = vld [vmem:[#allocation5 + $0x2f0] ss:$8 sps:$4 sm:$0xff]   ;;  %v1634_v53 = vld [vmem:[#allocation5 + $0x140] ss:$8 sps:$4 sm:$0xff]   ;;  %v1642_v55 = vld [vmem:[#allocation5 + $0x154] ss:$8 sps:$4 sm:$0xff]  }
  0x54   :  { %960 = vmatpush1.bf16.msra.mxu1 %v1542_v26  ;;  %v293_v15 = vpack.c.bf16 %v277_v11, %v277_v11  ;;  %v240_v26 = vcombine.low %v218_v60, %v232_v61  ;;  %v1616_v40 = vld [vmem:[#allocation5 + $0x110] ss:$8 sps:$4 sm:$0xff]   ;;  %v1645_v56 = vld [vmem:[#allocation5 + $0x354] ss:$8 sps:$4 sm:$0xff]   ;;  %v1651_v60 = vld [vmem:[#allocation5 + $0x364] ss:$8 sps:$4 sm:$0xff]  }
  0x55   :  { %1042 = vmatpush1.bf16.msra.mxu0 %v1543_v27  ;;  %961 = vmatprep.subr.bf16.mxu1 %v1544_v28  ;;  %v276_v27 = vcombine.low %v254_v6, %v268_v7  ;;  %v1606_v28 = vld [vmem:[#allocation5 + $0x104] ss:$8 sps:$4 sm:$0xff]   ;;  %v1646_v61 = vld [vmem:[#allocation5 + $0x160] ss:$8 sps:$4 sm:$0xff]   ;;  %v1654_v63 = vld [vmem:[#allocation5 + $0x174] ss:$8 sps:$4 sm:$0xff]  }
  0x56   :  { %1043 = vmatprep.subr.bf16.mxu0 %v1546_v29  ;;  %1061 = vmatprep.mubr.bf16.mxu0 %v293_v15  ;;  %v1615_v29 = vld [vmem:[#allocation5 + $0x304] ss:$8 sps:$4 sm:$0xff]   ;;  %v1657_v0 = vld [vmem:[#allocation5 + $0x374] ss:$8 sps:$4 sm:$0xff]   ;;  %v1652_v1 = vld [vmem:[#allocation5 + $0x170] ss:$8 sps:$4 sm:$0xff]  }
  0x57   :  { %v1658_v5 = vld [vmem:[#allocation5 + $0x180] ss:$8 sps:$4 sm:$0xff]   ;;  %v1666_v7 = vld [vmem:[#allocation5 + $0x194] ss:$8 sps:$4 sm:$0xff]   ;;  %v1667_v10 = vld [vmem:[#allocation5 + $0x390] ss:$8 sps:$4 sm:$0xff]  }
  0x58   :  { %962 = vmatpush1.bf16.msra.mxu1 %v1548_v30  ;;  %v243_v30 = vcombine.high %v1898_v20, %v1900_v21  ;;  %v1661_v6 = vld [vmem:[#allocation5 + $0x380] ss:$8 sps:$4 sm:$0xff]   ;;  %v1672_v11 = vld [vmem:[#allocation5 + $0x1a4] ss:$8 sps:$4 sm:$0xff]   ;;  %v1678_v15 = vld [vmem:[#allocation5 + $0x1b4] ss:$8 sps:$4 sm:$0xff]  }
  0x59   :  { %1044 = vmatpush1.bf16.msra.mxu0 %v1549_v31  ;;  %963 = vmatprep.subr.bf16.mxu1 %v1550_v32  ;;  %v279_v31 = vcombine.high %v1902_v22, %v1904_v23  ;;  %v1604_v32 = vld [vmem:[#allocation5 + $0x100] ss:$8 sps:$4 sm:$0xff]   ;;  %v1675_v12 = vld [vmem:[#allocation5 + $0x3a4] ss:$8 sps:$4 sm:$0xff]  }
  0x5a   :  { %1045 = vmatprep.subr.bf16.mxu0 %v1552_v33  ;;  %v1613_v33 = vld [vmem:[#allocation5 + $0x300] ss:$8 sps:$4 sm:$0xff]   ;;  %v291_v38 = vpack.c.bf16 %v243_v30, %v243_v30  ;;  %v1691_v30 = vld [vmem:[#allocation5 + $0x3d0] ss:$8 sps:$4 sm:$0xff]  }
  0x5b   :  { %v295_v39 = vpack.c.bf16 %v279_v31, %v279_v31  ;;  %v1670_v13 = vld [vmem:[#allocation5 + $0x1a0] ss:$8 sps:$4 sm:$0xff]   ;;  %v1696_v31 = vld [vmem:[#allocation5 + $0x1e4] ss:$8 sps:$4 sm:$0xff]  }
  0x5c   :  { %964 = vmatpush1.bf16.msra.mxu1 %v1554_v34  ;;  %v288_v34 = vpack.c.bf16 %v240_v26, %v240_v26  ;;  %v1673_v14 = vld [vmem:[#allocation5 + $0x3a0] ss:$8 sps:$4 sm:$0xff]  }
  0x5d   :  { %1046 = vmatpush1.bf16.msra.mxu0 %v1555_v35  ;;  %965 = vmatprep.subr.bf16.mxu1 %v1556_v36  ;;  %v292_v35 = vpack.c.bf16 %v276_v27, %v276_v27  ;;  %v1618_v36 = vld [vmem:[#allocation5 + $0x114] ss:$8 sps:$4 sm:$0xff]   ;;  %v1685_v26 = vld [vmem:[#allocation5 + $0x3c0] ss:$8 sps:$4 sm:$0xff]  }
  0x5e   :  { %1047 = vmatprep.subr.bf16.mxu0 %v1558_v37  ;;  %v1621_v37 = vld [vmem:[#allocation5 + $0x314] ss:$8 sps:$4 sm:$0xff]  }
  0x5f   :  { %v1690_v27 = vld [vmem:[#allocation5 + $0x1d4] ss:$8 sps:$4 sm:$0xff]  }
  0x60   :  { %966 = vmatpush1.bf16.msra.mxu1 %v1560_v41  ;;  %v1619_v41 = vld [vmem:[#allocation5 + $0x310] ss:$8 sps:$4 sm:$0xff]  }
  0x61   :  { %1048 = vmatpush1.bf16.msra.mxu0 %v1561_v42  ;;  %967 = vmatprep.subr.bf16.mxu1 %v1562_v43  ;;  %v1624_v42 = vld [vmem:[#allocation5 + $0x124] ss:$8 sps:$4 sm:$0xff]  }
  0x62   :  { %1049 = vmatprep.subr.bf16.mxu0 %v1564_v44  ;;  %v1627_v43 = vld [vmem:[#allocation5 + $0x324] ss:$8 sps:$4 sm:$0xff]   ;;  %v1622_v44 = vld [vmem:[#allocation5 + $0x120] ss:$8 sps:$4 sm:$0xff]  }
  0x64   :  { %968 = vmatpush1.bf16.msra.mxu1 %v1566_v47  ;;  %v1630_v47 = vld [vmem:[#allocation5 + $0x134] ss:$8 sps:$4 sm:$0xff]  }
  0x65   :  { %1050 = vmatpush1.bf16.msra.mxu0 %v1567_v48  ;;  %969 = vmatprep.subr.bf16.mxu1 %v1568_v49  ;;  %v1633_v48 = vld [vmem:[#allocation5 + $0x334] ss:$8 sps:$4 sm:$0xff]   ;;  %v1628_v49 = vld [vmem:[#allocation5 + $0x130] ss:$8 sps:$4 sm:$0xff]  }
  0x66   :  { %1051 = vmatprep.subr.bf16.mxu0 %v1570_v50  ;;  %v1631_v50 = vld [vmem:[#allocation5 + $0x330] ss:$8 sps:$4 sm:$0xff]  }
  0x68   :  { %970 = vmatpush1.bf16.msra.mxu1 %v1572_v51  ;;  %v1636_v51 = vld [vmem:[#allocation5 + $0x144] ss:$8 sps:$4 sm:$0xff]  }
  0x69   :  { %1052 = vmatpush1.bf16.msra.mxu0 %v1573_v52  ;;  %971 = vmatprep.subr.bf16.mxu1 %v1574_v54  ;;  %v1639_v52 = vld [vmem:[#allocation5 + $0x344] ss:$8 sps:$4 sm:$0xff]   ;;  %v1637_v54 = vld [vmem:[#allocation5 + $0x340] ss:$8 sps:$4 sm:$0xff]  }
  0x6a   :  { %1053 = vmatprep.subr.bf16.mxu0 %v1576_v57  ;;  %v1640_v57 = vld [vmem:[#allocation5 + $0x150] ss:$8 sps:$4 sm:$0xff]  }
  0x6c   :  { %972 = vmatpush1.bf16.msra.mxu1 %v1578_v58  ;;  %v1643_v58 = vld [vmem:[#allocation5 + $0x350] ss:$8 sps:$4 sm:$0xff]  }
  0x6d   :  { %1054 = vmatpush1.bf16.msra.mxu0 %v1579_v59  ;;  %973 = vmatprep.subr.bf16.mxu1 %v1580_v62  ;;  %v1648_v59 = vld [vmem:[#allocation5 + $0x164] ss:$8 sps:$4 sm:$0xff]   ;;  %v1649_v62 = vld [vmem:[#allocation5 + $0x360] ss:$8 sps:$4 sm:$0xff]  }
  0x6e   :  { %1055 = vmatprep.subr.bf16.mxu0 %v1582_v2  ;;  %v1655_v2 = vld [vmem:[#allocation5 + $0x370] ss:$8 sps:$4 sm:$0xff]  }
  0x70   :  { %974 = vmatpush1.bf16.msra.mxu1 %v1584_v3  ;;  %v1660_v3 = vld [vmem:[#allocation5 + $0x184] ss:$8 sps:$4 sm:$0xff]  }
  0x71   :  { %1056 = vmatpush1.bf16.msra.mxu0 %v1585_v4  ;;  %975 = vmatprep.subr.bf16.mxu1 %v1586_v8  ;;  %v1663_v4 = vld [vmem:[#allocation5 + $0x384] ss:$8 sps:$4 sm:$0xff]   ;;  %v1669_v8 = vld [vmem:[#allocation5 + $0x394] ss:$8 sps:$4 sm:$0xff]  }
  0x72   :  { %1057 = vmatprep.subr.bf16.mxu0 %v1588_v9  ;;  %v1664_v9 = vld [vmem:[#allocation5 + $0x190] ss:$8 sps:$4 sm:$0xff]  }
  0x74   :  { %976 = vmatpush1.bf16.msra.mxu1 %v1590_v16  ;;  %v1681_v16 = vld [vmem:[#allocation5 + $0x3b4] ss:$8 sps:$4 sm:$0xff]  }
  0x75   :  { %1058 = vmatpush1.bf16.msra.mxu0 %v1591_v17  ;;  %977 = vmatprep.subr.bf16.mxu1 %v1592_v18  ;;  %v1676_v17 = vld [vmem:[#allocation5 + $0x1b0] ss:$8 sps:$4 sm:$0xff]  }
  0x76   :  { %1059 = vmatprep.subr.bf16.mxu0 %v1594_v19  ;;  %v1679_v18 = vld [vmem:[#allocation5 + $0x3b0] ss:$8 sps:$4 sm:$0xff]   ;;  %v1684_v19 = vld [vmem:[#allocation5 + $0x1c4] ss:$8 sps:$4 sm:$0xff]  }
  0x78   :  { %978 = vmatpush1.bf16.msra.mxu1 %v1596_v24  ;;  %v1687_v24 = vld [vmem:[#allocation5 + $0x3c4] ss:$8 sps:$4 sm:$0xff]  }
  0x79   :  { %1060 = vmatpush1.bf16.msra.mxu0 %v1597_v25  ;;  %988 = vmatprep.subr.bf16.mxu1 %v1606_v28  ;;  %v1682_v25 = vld [vmem:[#allocation5 + $0x1c0] ss:$8 sps:$4 sm:$0xff]   ;;  %v1693_v28 = vld [vmem:[#allocation5 + $0x3d4] ss:$8 sps:$4 sm:$0xff]  }
  0x7a   :  { %1070 = vmatprep.subr.bf16.mxu0 %v1615_v29  ;;  %v1688_v29 = vld [vmem:[#allocation5 + $0x1d0] ss:$8 sps:$4 sm:$0xff]  }
  0x7b   :  { %980 = vmatmul.mubr.bf16.vlgmr.msra.gmra.mrb[0].mxu1 %v288_v34  ;;  %v1697_v34 = vld [vmem:[#allocation5 + $0x3e0] ss:$8 sps:$4 sm:$0xff]  }
  0x7c   :  { %1062 = vmatmul.mubr.bf16.vlgmr.msra.gmra.mrb[0].mxu0 %v292_v35  ;;  %989 = vmatpush1.bf16.msra.mxu1 %v1604_v32  ;;  %v1699_v32 = vld [vmem:[#allocation5 + $0x3e4] ss:$8 sps:$4 sm:$0xff]   ;;  %v1702_v35 = vld [vmem:[#allocation5 + $0x1f4] ss:$8 sps:$4 sm:$0xff]  }
  0x7d   :  { %1071 = vmatpush1.bf16.msra.mxu0 %v1613_v33  ;;  %990 = vmatprep.subr.bf16.mxu1 %v1618_v36  ;;  %v1694_v33 = vld [vmem:[#allocation5 + $0x1e0] ss:$8 sps:$4 sm:$0xff]   ;;  %v1705_v36 = vld [vmem:[#allocation5 + $0x3f4] ss:$8 sps:$4 sm:$0xff]  }
  0x7e   :  { %1072 = vmatprep.subr.bf16.mxu0 %v1621_v37  ;;  %1020 = vmatprep.mubr.bf16.mxu1 %v291_v38  ;;  %v242_v37 = vcombine.low %v1898_v20, %v1900_v21  ;;  %v278_v38 = vcombine.low %v1902_v22, %v1904_v23  ;;  %v1709_v20 = vld [vmem:[#allocation7 + $0x8] sm:$0xff]   ;;  %v1710_v21 = vld [vmem:[#allocation7 + $0x50] sm:$0xff]   ;;  %v1712_v23 = vld [vmem:[#allocation7 + $0x58] sm:$0xff]  }
  0x7f   :  { %1102 = vmatprep.mubr.bf16.mxu0 %v295_v39  ;;  %v1700_v39 = vld [vmem:[#allocation5 + $0x1f0] ss:$8 sps:$4 sm:$0xff]  }
  0x80   :  { %991 = vmatpush1.bf16.msra.mxu1 %v1616_v40  ;;  %v1703_v40 = vld [vmem:[#allocation5 + $0x3f0] ss:$8 sps:$4 sm:$0xff]  }
  0x81   :  { %1073 = vmatpush1.bf16.msra.mxu0 %v1619_v41  ;;  %992 = vmatprep.subr.bf16.mxu1 %v1624_v42  ;;  %v1706_v41 = vld [vmem:[#allocation7 + $0x40] sm:$0xff]   ;;  %v290_v42 = vpack.c.bf16 %v242_v37, %v242_v37  ;;  %v1711_v22 = vld [vmem:[#allocation7 + $0x10] sm:$0xff]  }
  0x82   :  { %1074 = vmatprep.subr.bf16.mxu0 %v1627_v43  ;;  %v294_v43 = vpack.c.bf16 %v278_v38, %v278_v38 }
  0x84   :  { %993 = vmatpush1.bf16.msra.mxu1 %v1622_v44  ;;  %v1707_v44 = vld [vmem:[#allocation7] sm:$0xff]  }
  0x85   :  { %1075 = vmatpush1.bf16.msra.mxu0 %v1625_v45  ;;  %994 = vmatprep.subr.bf16.mxu1 %v1630_v47  ;;  %v1708_v45 = vld [vmem:[#allocation7 + $0x48] sm:$0xff]   ;;  %v1713_v47 = vld [vmem:[#allocation7 + $0x18] sm:$0xff]  }
  0x86   :  { %1076 = vmatprep.subr.bf16.mxu0 %v1633_v48  ;;  %v1714_v48 = vld [vmem:[#allocation7 + $0x60] sm:$0xff]  }
  0x88   :  { %995 = vmatpush1.bf16.msra.mxu1 %v1628_v49  ;;  %v1715_v49 = vld [vmem:[#allocation7 + $0x20] sm:$0xff]  }
  0x89   :  { %1077 = vmatpush1.bf16.msra.mxu0 %v1631_v50  ;;  %996 = vmatprep.subr.bf16.mxu1 %v1636_v51  ;;  %v1716_v50 = vld [vmem:[#allocation7 + $0x68] sm:$0xff]  }
  0x8a   :  { %1078 = vmatprep.subr.bf16.mxu0 %v1639_v52  ;;  %v1717_v51 = vld [vmem:[#allocation7 + $0x28] sm:$0xff]   ;;  %v1718_v52 = vld [vmem:[#allocation7 + $0x70] sm:$0xff]  }
  0x8c   :  { %997 = vmatpush1.bf16.msra.mxu1 %v1634_v53  ;;  %v1719_v53 = vld [vmem:[#allocation7 + $0x30] sm:$0xff]  }
  0x8d   :  { %1079 = vmatpush1.bf16.msra.mxu0 %v1637_v54  ;;  %998 = vmatprep.subr.bf16.mxu1 %v1642_v55  ;;  %v1720_v54 = vld [vmem:[#allocation7 + $0x78] sm:$0xff]  }
  0x8e   :  { %1080 = vmatprep.subr.bf16.mxu0 %v1645_v56  ;;  %v1721_v55 = vld [vmem:[#allocation7 + $0x38] sm:$0xff]   ;;  %v299_v56 = vsub.s32 0, %v1895_v46 }
  0x90   :  { %999 = vmatpush1.bf16.msra.mxu1 %v1640_v57  ;;  %v199_v57 = vld [vmem:[%s1936_s2] sm:$0x3] }
  0x91   :  { %1081 = vmatpush1.bf16.msra.mxu0 %v1643_v58  ;;  %1000 = vmatprep.subr.bf16.mxu1 %v1648_v59  ;;  %v303_v58 = vsub.s32 1, %v1895_v46  ;;  %v300_v59 = vrot.slane %v199_v57, %v299_v56 }
  0x92   :  { %1082 = vmatprep.subr.bf16.mxu0 %v1651_v60 }
  0x93   :  { %v304_v60 = vrot.slane %v199_v57, %v303_v58 }
  0x94   :  { %1001 = vmatpush1.bf16.msra.mxu1 %v1646_v61 }
  0x95   :  { %1083 = vmatpush1.bf16.msra.mxu0 %v1649_v62  ;;  %1002 = vmatprep.subr.bf16.mxu1 %v1654_v63 }
  0x96   :  { %1084 = vmatprep.subr.bf16.mxu0 %v1657_v0 }
  0x98   :  { %1003 = vmatpush1.bf16.msra.mxu1 %v1652_v1 }
  0x99   :  { %1085 = vmatpush1.bf16.msra.mxu0 %v1655_v2  ;;  %1004 = vmatprep.subr.bf16.mxu1 %v1660_v3 }
  0x9a   :  { %1086 = vmatprep.subr.bf16.mxu0 %v1663_v4 }
  0x9c   :  { %1005 = vmatpush1.bf16.msra.mxu1 %v1658_v5 }
  0x9d   :  { %1087 = vmatpush1.bf16.msra.mxu0 %v1661_v6  ;;  %1006 = vmatprep.subr.bf16.mxu1 %v1666_v7 }
  0x9e   :  { %1088 = vmatprep.subr.bf16.mxu0 %v1669_v8 }
  0xa0   :  { %1007 = vmatpush1.bf16.msra.mxu1 %v1664_v9 }
  0xa1   :  { %1089 = vmatpush1.bf16.msra.mxu0 %v1667_v10  ;;  %1008 = vmatprep.subr.bf16.mxu1 %v1672_v11 }
  0xa2   :  { %1090 = vmatprep.subr.bf16.mxu0 %v1675_v12 }
  0xa4   :  { %1009 = vmatpush1.bf16.msra.mxu1 %v1670_v13  ;;  %v1438_v13 = vld [vmem:[%s1938_s4] ss:$0 sm:$0xff] }
  0xa5   :  { %1091 = vmatpush1.bf16.msra.mxu0 %v1673_v14  ;;  %1010 = vmatprep.subr.bf16.mxu1 %v1678_v15 }
  0xa6   :  { %1092 = vmatprep.subr.bf16.mxu0 %v1681_v16 }
  0xa8   :  { %1011 = vmatpush1.bf16.msra.mxu1 %v1676_v17 }
  0xa9   :  { %1093 = vmatpush1.bf16.msra.mxu0 %v1679_v18  ;;  %1012 = vmatprep.subr.bf16.mxu1 %v1684_v19 }
  0xaa   :  { %1094 = vmatprep.subr.bf16.mxu0 %v1687_v24 }
  0xac   :  { %1013 = vmatpush1.bf16.msra.mxu1 %v1682_v25 }
  0xad   :  { %1095 = vmatpush1.bf16.msra.mxu0 %v1685_v26  ;;  %1014 = vmatprep.subr.bf16.mxu1 %v1690_v27 }
  0xae   :  { %1096 = vmatprep.subr.bf16.mxu0 %v1693_v28 }
  0xb0   :  { %1015 = vmatpush1.bf16.msra.mxu1 %v1688_v29 }
  0xb1   :  { %1097 = vmatpush1.bf16.msra.mxu0 %v1691_v30  ;;  %1016 = vmatprep.subr.bf16.mxu1 %v1696_v31 }
  0xb2   :  { %1098 = vmatprep.subr.bf16.mxu0 %v1699_v32 }
  0xb4   :  { %1017 = vmatpush1.bf16.msra.mxu1 %v1694_v33 }
  0xb5   :  { %1099 = vmatpush1.bf16.msra.mxu0 %v1697_v34  ;;  %1018 = vmatprep.subr.bf16.mxu1 %v1702_v35 }
  0xb6   :  { %1100 = vmatprep.subr.bf16.mxu0 %v1705_v36 }
  0xb8   :  { %1019 = vmatpush1.bf16.msra.mxu1 %v1700_v39 }
  0xb9   :  { %1101 = vmatpush1.bf16.msra.mxu0 %v1703_v40  ;;  %1455 = vmatprep.subr.bf16.mxu1 %v1706_v41 }
  0xbb   :  { %1021 = vmatmul.mubr.bf16.vlgmr.msra.gmra.mrb[0].mxu1 %v290_v42 }
  0xbc   :  { %1103 = vmatmul.mubr.bf16.vlgmr.msra.gmra.mrb[0].mxu0 %v294_v43  ;;  %1456 = vmatpush3.bf16.msra.mxu1 %v1707_v44 }
  0xbd   :  { %1457 = vmatprep.subr.bf16.mxu1 %v1708_v45 }
  0xc0   :  { %1458 = vmatpush3.bf16.msra.mxu1 %v1709_v20 }
  0xc1   :  { %1459 = vmatprep.subr.bf16.mxu1 %v1710_v21 }
  0xc4   :  { %1460 = vmatpush3.bf16.msra.mxu1 %v1711_v22 }
  0xc5   :  { %1461 = vmatprep.subr.bf16.mxu1 %v1712_v23 }
  0xc8   :  { %1462 = vmatpush3.bf16.msra.mxu1 %v1713_v47 }
  0xc9   :  { %1463 = vmatprep.subr.bf16.mxu1 %v1714_v48 }
  0xcc   :  { %1464 = vmatpush3.bf16.msra.mxu1 %v1715_v49 }
  0xcd   :  { %1465 = vmatprep.subr.bf16.mxu1 %v1716_v50 }
  0xd0   :  { %1466 = vmatpush3.bf16.msra.mxu1 %v1717_v51 }
  0xd1   :  { %1467 = vmatprep.subr.bf16.mxu1 %v1718_v52 }
  0xd4   :  { %1468 = vmatpush3.bf16.msra.mxu1 %v1719_v53 }
  0xd5   :  { %1469 = vmatprep.subr.bf16.mxu1 %v1720_v54 }
  0xd8   :  { %1470 = vmatpush3.bf16.msra.mxu1 %v1721_v55 }
 0x18e   :  { %v1022_v61 = vpop.f32.mrb[0].mxu1 }
 0x18f   :  { %v1104_v62 = vpop.f32.mrb[0].mxu0  ;;  %v1477_v63 = vadd.f32 %v1022_v61, %v300_v59  ;;  %v1024_v0 = vpop.f32.mrb[1].mxu1 }
 0x190   :  { %v1106_v1 = vpop.f32.mrb[1].mxu0  ;;  %v1479_v2 = vadd.f32 %v1024_v0, %v304_v60  ;;  %v1026_v3 = vpop.f32.mrb[2].mxu1 }
 0x191   :  { %v1108_v4 = vpop.f32.mrb[2].mxu0  ;;  %v1478_v5 = vadd.f32 %v1477_v63, %v1104_v62  ;;  %v1027_v6 = vpop.f32.mrb[3].mxu1 }
 0x192   :  { %v1109_v7 = vpop.f32.mrb[3].mxu0  ;;  %v1480_v8 = vadd.f32 %v1479_v2, %v1106_v1 }
 0x193   :  { %v1111_v9 = vmax.f32 %v1478_v5, 0.0 }
 0x194   :  { %v1112_v10 = vmax.f32 %v1480_v8, 0.0 }
 0x195   :  { %v1146_v12 = vpack.c.bf16 %v1111_v9, %v1111_v9 }
 0x196   :  { %v1147_v11 = vpack.c.bf16 %v1112_v10, %v1112_v10 }
 0x198   :  { %1282 = vmatprep.mubr.bf16.mxu1 %v1147_v11 }
 0x199   :  { %1283 = vmatmul.mubr.bf16.vlgmr.msra.gmra.mrb[4].mxu1 %v1146_v12 }
 0x26c   :  { %v1471_v46 = vpop.f32.mrb[4].mxu1 }
 0x26d   :  { %v1472_v14 = vpop.f32.mrb[5].mxu1 }
 0x26e   :  { %v1473_v15 = vadd.f32 %v1472_v14, %v1471_v46  ;;  %v1474_v16 = vpop.f32.mrb[6].mxu1 }
 0x26f   :  { %v1475_v17 = vpop.f32.mrb[7].mxu1 }
 0x270   :  { %v1285_v18 = vadd.f32 %v1473_v15, %v1438_v13 }
 0x272   :  { %v1290_v19 = vmax.f32 %v1285_v18, 0.0 }
 0x274   :  { %1291 = vst [vmem:[#allocation8] sm:$0xff] %v1290_v19 }
 0x275   :  { %1296 = vsyncadd [#allocation4], 96  ;;  %s1826_s11 = smov [#allocation8]  }
 0x276   :  { %s1297_s12 = sshll.u32 %s1826_s11, 4  ;;  %s1298_s12 = int_to_ptr.vmem [resolvable:$true] %s1297_s12 }
 0x277   :  { %s1788_s13 = scalar_lea.vmem %s1298_s12, 32  ;;  %s1792_s14 = scalar_lea.vmem %s1298_s12, 128 }
 0x278   :  { %p1789_p10 = scmp.ne.s32.totalorder %s1298_s12, %s1788_s13  ;;  %p1793_p11 = scmp.lt.s32.totalorder %s1298_s12, %s1298_s12 }
 0x279   :  { %p1794_p12 = scmp.lt.s32.totalorder %s1792_s14, %s1788_s13 }
 0x27b   :  { %p1795_p13 = por %p1794_p12, %p1793_p11 }
 0x27d   :  { %p1796_p0 = pnand %p1795_p13, %p1789_p10 }
 0x27f   :  { %1799 = shalt.err (!%p1796_p0)
}
 0x280   :  { %s1800_s16 = scalar_lea.hbm %s1939_s5, 32 }
 0x281   :  { %p1801_p1 = scmp.ne.s32.totalorder %s1939_s5, %s1800_s16  ;;  %p1804_p2 = scmp.lt.u32.totalorder %s1800_s16, %s1939_s5 }
 0x283   :  { %p1806_p3 = pnand %p1804_p2, %p1801_p1 }
 0x285   :  { %1809 = shalt.err (!%p1806_p3)
}
 0x286   :  { %s1827_s20 = smov 32   ;;  %s1828_s21 = smov 2  }
 0x287   :  { %1303 = dma.vmem_to_hbm [thread:$0]  %s1298_s12, 32, %s1939_s5, [#allocation4], %s1827_s20, %s1827_s20, %s1828_s21  }
 0x288   :  { %1814 = dma.done.wait [#allocation4], 128  }
 0x289   :  { %1815 = vsyncadd [#allocation4], 4294967168 }
 0x28a   :  { %1307 = vsyncpa [#allocation3], 1 }
 0x28b   :  { %1308 = vsyncpa [#allocation6], 1 }
 0x28c   :  { %1309 = vsyncpa [#allocation4], 1 }

// kernel: tpu_custom_call.1
= control target key start
LH: loop header
LB: loop body
LE: loop exit
PB: predicated region body
PF: predicated region fallthrough
CT: control target
= control target key end

     0   :  { %10 = vsyncpa [#allocation3], 0  ;;  %s1934_s0 = inlined_call_operand.hbm [shape: f32[2,1024], index: 0, kind: input, shape index: {}]   ;;  %s1935_s1 = inlined_call_operand.hbm [shape: bf16[1024,256], index: 1, kind: input, shape index: {}]   ;;  %s1936_s2 = inlined_call_operand.vmem [shape: f32[1,256], index: 2, kind: input, shape index: {}]   ;;  %s1937_s3 = inlined_call_operand.hbm [shape: bf16[256,128], index: 3, kind: input, shape index: {}]   ;;  %s1938_s4 = inlined_call_operand.vmem [shape: f32[1,128], index: 4, kind: input, shape index: {}]   ;;  %s1939_s5 = inlined_call_operand.hbm [shape: f32[2,128], index: 5, kind: output, shape index: {}]  }
   0x1   :  { %11 = vsyncpa [#allocation6], 0 }
   0x2   :  { %12 = vsyncpa [#allocation4], 0 }
   0x3   :  { %17 = vsyncadd [#allocation3], 768  ;;  %s1816_s18 = smov [#allocation5]   ;;  %s1722_s22 = scalar_lea.hbm %s1935_s1, 16384 }
   0x4   :  { %s30_s19 = sshll.u32 %s1816_s18, 4  ;;  %p1723_p0 = scmp.ne.s32.totalorder %s1935_s1, %s1722_s22  ;;  %s31_s19 = int_to_ptr.vmem [resolvable:$true] %s30_s19 }
   0x5   :  { %p1726_p1 = scmp.lt.u32.totalorder %s1722_s22, %s1935_s1 }
   0x7   :  { %p1728_p2 = pnand %p1726_p1, %p1723_p0 }
   0x9   :  { %1731 = shalt.err (!%p1728_p2)
}
   0xa   :  { %s1732_s27 = scalar_lea.vmem %s31_s19, 16384  ;;  %p1737_p4 = scmp.lt.s32.totalorder %s31_s19, %s31_s19 }
   0xb   :  { %p1733_p3 = scmp.ne.s32.totalorder %s31_s19, %s1732_s27  ;;  %p1738_p5 = scmp.lt.s32.totalorder %s1732_s27, %s1732_s27 }
   0xd   :  { %p1739_p6 = por %p1738_p5, %p1737_p4 }
   0xf   :  { %p1740_p7 = pnand %p1739_p6, %p1733_p3 }
  0x11   :  { %1743 = shalt.err (!%p1740_p7)
}
  0x12   :  { %s1817_s28 = smov 128   ;;  %s1818_s29 = smov 8  }
  0x13   :  { %36 = dma.hbm_to_vmem [thread:$0]  %s1935_s1, 16384, %s31_s19, [#allocation6], %s1817_s28, %s1817_s28, %s1818_s29  }
  0x14   :  { %s1819_s7 = smov [#allocation2]   ;;  %s1744_s11 = scalar_lea.hbm %s1934_s0, 256 }
  0x15   :  { %s18_s8 = sshll.u32 %s1819_s7, 4  ;;  %p1745_p8 = scmp.ne.s32.totalorder %s1934_s0, %s1744_s11  ;;  %s19_s8 = int_to_ptr.vmem [resolvable:$true] %s18_s8 }
  0x16   :  { %p1748_p9 = scmp.lt.u32.totalorder %s1744_s11, %s1934_s0 }
  0x18   :  { %p1750_p10 = pnand %p1748_p9, %p1745_p8 }
  0x1a   :  { %1753 = shalt.err (!%p1750_p10)
}
  0x1b   :  { %s1754_s16 = scalar_lea.vmem %s19_s8, 256  ;;  %s1758_s1 = scalar_lea.vmem %s19_s8, 1024 }
  0x1c   :  { %p1755_p11 = scmp.ne.s32.totalorder %s19_s8, %s1754_s16  ;;  %p1759_p12 = scmp.lt.s32.totalorder %s19_s8, %s19_s8 }
  0x1d   :  { %p1760_p13 = scmp.lt.s32.totalorder %s1758_s1, %s1754_s16 }
  0x1f   :  { %p1761_p0 = por %p1760_p13, %p1759_p12 }
  0x21   :  { %p1762_p1 = pnand %p1761_p0, %p1755_p11 }
  0x23   :  { %1765 = shalt.err (!%p1762_p1)
}
  0x24   :  { %s1820_s17 = smov 256   ;;  %s1821_s18 = smov 16  }
  0x25   :  { %24 = dma.hbm_to_vmem [thread:$0]  %s1934_s0, 256, %s19_s8, [#allocation3], %s1820_s17, %s1820_s17, %s1821_s18  }
  0x26   :  { %s1822_s21 = smov [#allocation7]   ;;  %s1766_s25 = scalar_lea.hbm %s1937_s3, 2048 }
  0x27   :  { %s44_s22 = sshll.u32 %s1822_s21, 4  ;;  %p1767_p2 = scmp.ne.s32.totalorder %s1937_s3, %s1766_s25  ;;  %s45_s22 = int_to_ptr.vmem [resolvable:$true] %s44_s22 }
  0x28   :  { %p1770_p3 = scmp.lt.u32.totalorder %s1766_s25, %s1937_s3 }
  0x2a   :  { %p1772_p4 = pnand %p1770_p3, %p1767_p2 }
  0x2c   :  { %1775 = shalt.err (!%p1772_p4)
}
  0x2d   :  { %s1776_s30 = scalar_lea.vmem %s45_s22, 2048  ;;  %p1781_p6 = scmp.lt.s32.totalorder %s45_s22, %s45_s22 }
  0x2e   :  { %p1777_p5 = scmp.ne.s32.totalorder %s45_s22, %s1776_s30  ;;  %p1782_p7 = scmp.lt.s32.totalorder %s1776_s30, %s1776_s30 }
  0x30   :  { %p1783_p8 = por %p1782_p7, %p1781_p6 }
  0x32   :  { %p1784_p9 = pnand %p1783_p8, %p1777_p5 }
  0x34   :  { %1787 = shalt.err (!%p1784_p9)
}
  0x35   :  { %s1823_s0 = smov 64   ;;  %s1824_s6 = smov 4  }
  0x36   :  { %50 = dma.hbm_to_vmem [thread:$0]  %s1937_s3, 2048, %s45_s22, [#allocation6], %s1823_s0, %s1823_s0, %s1824_s6  }
  0x37   :  { %1810 = dma.done.wait [#allocation3], 1024  }
  0x38   :  { %1811 = vsyncadd [#allocation3], 4294966272 }
  0x39   :  { %1812 = dma.done.wait [#allocation6], 18432  }
  0x3a   :  { %1813 = vsyncadd [#allocation6], 4294948864  ;;  %v1502_v0 = vld [vmem:[#allocation5 + $0x4] ss:$8 sps:$4 sm:$0xff]   ;;  %v1506_v2 = vld [vmem:[#allocation5] ss:$8 sps:$4 sm:$0xff]   ;;  %v215_v40 = vlaneseq }
  0x3b   :  { %v1504_v1 = vld [vmem:[#allocation5 + $0x204] ss:$8 sps:$4 sm:$0xff]   ;;  %947 = vmatprep.subr.bf16.mxu1 %v1502_v0  ;;  %v1507_v3 = vld [vmem:[#allocation5 + $0x200] ss:$8 sps:$4 sm:$0xff]   ;;  %v1508_v4 = vld [vmem:[#allocation5 + $0x14] ss:$8 sps:$4 sm:$0xff]  }
  0x3c   :  { %1029 = vmatprep.subr.bf16.mxu0 %v1504_v1  ;;  %948 = vmatpush1.bf16.msra.mxu1 %v1506_v2  ;;  %v1510_v5 = vld [vmem:[#allocation5 + $0x214] ss:$8 sps:$4 sm:$0xff]   ;;  %v1512_v6 = vld [vmem:[#allocation5 + $0x10] ss:$8 sps:$4 sm:$0xff]   ;;  %v1514_v8 = vld [vmem:[#allocation5 + $0x24] ss:$8 sps:$4 sm:$0xff]  }
  0x3d   :  { %1030 = vmatpush1.bf16.msra.mxu0 %v1507_v3  ;;  %949 = vmatprep.subr.bf16.mxu1 %v1508_v4  ;;  %v1513_v7 = vld [vmem:[#allocation5 + $0x210] ss:$8 sps:$4 sm:$0xff]   ;;  %v1516_v9 = vld [vmem:[#allocation5 + $0x224] ss:$8 sps:$4 sm:$0xff]   ;;  %v1518_v10 = vld [vmem:[#allocation5 + $0x20] ss:$8 sps:$4 sm:$0xff]  }
  0x3e   :  { %1031 = vmatprep.subr.bf16.mxu0 %v1510_v5  ;;  %v1519_v11 = vld [vmem:[#allocation5 + $0x220] ss:$8 sps:$4 sm:$0xff]   ;;  %v1520_v12 = vld [vmem:[#allocation5 + $0x34] ss:$8 sps:$4 sm:$0xff]   ;;  %v1524_v14 = vld [vmem:[#allocation5 + $0x30] ss:$8 sps:$4 sm:$0xff]  }
  0x3f   :  { %v1522_v13 = vld [vmem:[#allocation5 + $0x234] ss:$8 sps:$4 sm:$0xff]   ;;  %v1525_v15 = vld [vmem:[#allocation5 + $0x230] ss:$8 sps:$4 sm:$0xff]   ;;  %v1526_v16 = vld [vmem:[#allocation5 + $0x44] ss:$8 sps:$4 sm:$0xff]  }
  0x40   :  { %950 = vmatpush1.bf16.msra.mxu1 %v1512_v6  ;;  %v1528_v17 = vld [vmem:[#allocation5 + $0x244] ss:$8 sps:$4 sm:$0xff]   ;;  %v1530_v18 = vld [vmem:[#allocation5 + $0x40] ss:$8 sps:$4 sm:$0xff]   ;;  %v1532_v20 = vld [vmem:[#allocation5 + $0x54] ss:$8 sps:$4 sm:$0xff]  }
  0x41   :  { %1032 = vmatpush1.bf16.msra.mxu0 %v1513_v7  ;;  %951 = vmatprep.subr.bf16.mxu1 %v1514_v8  ;;  %v1531_v19 = vld [vmem:[#allocation5 + $0x240] ss:$8 sps:$4 sm:$0xff]   ;;  %v1534_v21 = vld [vmem:[#allocation5 + $0x254] ss:$8 sps:$4 sm:$0xff]   ;;  %v1536_v22 = vld [vmem:[#allocation5 + $0x50] ss:$8 sps:$4 sm:$0xff]  }
  0x42   :  { %1033 = vmatprep.subr.bf16.mxu0 %v1516_v9  ;;  %v1537_v23 = vld [vmem:[#allocation5 + $0x250] ss:$8 sps:$4 sm:$0xff]   ;;  %v1538_v24 = vld [vmem:[#allocation5 + $0x64] ss:$8 sps:$4 sm:$0xff]   ;;  %v1542_v26 = vld [vmem:[#allocation5 + $0x60] ss:$8 sps:$4 sm:$0xff]  }
  0x43   :  { %v1540_v25 = vld [vmem:[#allocation5 + $0x264] ss:$8 sps:$4 sm:$0xff]   ;;  %v1543_v27 = vld [vmem:[#allocation5 + $0x260] ss:$8 sps:$4 sm:$0xff]   ;;  %v1544_v28 = vld [vmem:[#allocation5 + $0x74] ss:$8 sps:$4 sm:$0xff]  }
  0x44   :  { %952 = vmatpush1.bf16.msra.mxu1 %v1518_v10  ;;  %v1546_v29 = vld [vmem:[#allocation5 + $0x274] ss:$8 sps:$4 sm:$0xff]   ;;  %v1548_v30 = vld [vmem:[#allocation5 + $0x70] ss:$8 sps:$4 sm:$0xff]   ;;  %v1550_v32 = vld [vmem:[#allocation5 + $0x84] ss:$8 sps:$4 sm:$0xff]  }
  0x45   :  { %1034 = vmatpush1.bf16.msra.mxu0 %v1519_v11  ;;  %953 = vmatprep.subr.bf16.mxu1 %v1520_v12  ;;  %v1549_v31 = vld [vmem:[#allocation5 + $0x270] ss:$8 sps:$4 sm:$0xff]   ;;  %v1552_v33 = vld [vmem:[#allocation5 + $0x284] ss:$8 sps:$4 sm:$0xff]   ;;  %v1554_v34 = vld [vmem:[#allocation5 + $0x80] ss:$8 sps:$4 sm:$0xff]  }
  0x46   :  { %1035 = vmatprep.subr.bf16.mxu0 %v1522_v13  ;;  %v1555_v35 = vld [vmem:[#allocation5 + $0x280] ss:$8 sps:$4 sm:$0xff]   ;;  %v1556_v36 = vld [vmem:[#allocation5 + $0x94] ss:$8 sps:$4 sm:$0xff]   ;;  %v1825_v38 = vmov 1983009808  }
  0x47   :  { %v1558_v37 = vld [vmem:[#allocation5 + $0x294] ss:$8 sps:$4 sm:$0xff]   ;;  %v213_v39 = vunpack.c.l.s4 %v1825_v38  ;;  %v1560_v41 = vld [vmem:[#allocation5 + $0x90] ss:$8 sps:$4 sm:$0xff]   ;;  %v1562_v43 = vld [vmem:[#allocation5 + $0xa4] ss:$8 sps:$4 sm:$0xff]  }
  0x48   :  { %954 = vmatpush1.bf16.msra.mxu1 %v1524_v14  ;;  %v1561_v42 = vld [vmem:[#allocation5 + $0x290] ss:$8 sps:$4 sm:$0xff]   ;;  %v1564_v44 = vld [vmem:[#allocation5 + $0x2a4] ss:$8 sps:$4 sm:$0xff]   ;;  %v1895_v46 = vshrl.u32 %v215_v40, 7 }
  0x49   :  { %1036 = vmatpush1.bf16.msra.mxu0 %v1525_v15  ;;  %955 = vmatprep.subr.bf16.mxu1 %v1526_v16  ;;  %v214_v45 = vunpack.c.0.s8 %v213_v39  ;;  %v1566_v47 = vld [vmem:[#allocation5 + $0xa0] ss:$8 sps:$4 sm:$0xff]   ;;  %v1568_v49 = vld [vmem:[#allocation5 + $0xb4] ss:$8 sps:$4 sm:$0xff]   ;;  %v1572_v51 = vld [vmem:[#allocation5 + $0xb0] ss:$8 sps:$4 sm:$0xff]  }
  0x4a   :  { %1037 = vmatprep.subr.bf16.mxu0 %v1528_v17  ;;  %v1567_v48 = vld [vmem:[#allocation5 + $0x2a0] ss:$8 sps:$4 sm:$0xff]   ;;  %v1570_v50 = vld [vmem:[#allocation5 + $0x2b4] ss:$8 sps:$4 sm:$0xff]   ;;  %v1573_v52 = vld [vmem:[#allocation5 + $0x2b0] ss:$8 sps:$4 sm:$0xff]  }
  0x4b   :  { %v217_v53 = vsub.s32 %v214_v45, %v1895_v46  ;;  %v1574_v54 = vld [vmem:[#allocation5 + $0xc4] ss:$8 sps:$4 sm:$0xff]   ;;  %v1598_v55 = vld [vmem:[#allocation2] ss:$16 sps:$4 sm:$0xff]   ;;  %v1580_v62 = vld [vmem:[#allocation5 + $0xd4] ss:$8 sps:$4 sm:$0xff]  }
  0x4c   :  { %956 = vmatpush1.bf16.msra.mxu1 %v1530_v18  ;;  %v1601_v56 = vld [vmem:[#allocation2 + $0x20] ss:$16 sps:$4 sm:$0xff]   ;;  %v1576_v57 = vld [vmem:[#allocation5 + $0x2c4] ss:$8 sps:$4 sm:$0xff]   ;;  %v1607_v0 = vld [vmem:[#allocation2 + $0x8] ss:$16 sps:$4 sm:$0xff]  }
  0x4d   :  { %1038 = vmatpush1.bf16.msra.mxu0 %v1531_v19  ;;  %957 = vmatprep.subr.bf16.mxu1 %v1532_v20  ;;  %v1578_v58 = vld [vmem:[#allocation5 + $0xc0] ss:$8 sps:$4 sm:$0xff]   ;;  %v218_v60 = vrot.slane %v1598_v55, %v217_v53  ;;  %v232_v61 = vrot.slane %v1601_v56, %v217_v53  ;;  %v1582_v2 = vld [vmem:[#allocation5 + $0x2d4] ss:$8 sps:$4 sm:$0xff]   ;;  %v1584_v3 = vld [vmem:[#allocation5 + $0xd0] ss:$8 sps:$4 sm:$0xff]   ;;  %v254_v6 = vrot.slane %v1607_v0, %v217_v53 }
  0x4e   :  { %1039 = vmatprep.subr.bf16.mxu0 %v1534_v21  ;;  %v1579_v59 = vld [vmem:[#allocation5 + $0x2c0] ss:$8 sps:$4 sm:$0xff]   ;;  %v1585_v4 = vld [vmem:[#allocation5 + $0x2d0] ss:$8 sps:$4 sm:$0xff]   ;;  %v1586_v8 = vld [vmem:[#allocation5 + $0xe4] ss:$8 sps:$4 sm:$0xff]  }
  0x4f   :  { %v241_v63 = vcombine.high %v218_v60, %v232_v61  ;;  %v1610_v1 = vld [vmem:[#allocation2 + $0x28] ss:$16 sps:$4 sm:$0xff]   ;;  %v1588_v9 = vld [vmem:[#allocation5 + $0x2e4] ss:$8 sps:$4 sm:$0xff]   ;;  %v1592_v18 = vld [vmem:[#allocation5 + $0xf4] ss:$8 sps:$4 sm:$0xff]  }
  0x50   :  { %958 = vmatpush1.bf16.msra.mxu1 %v1536_v22  ;;  %v268_v7 = vrot.slane %v1610_v1, %v217_v53  ;;  %v1600_v10 = vld [vmem:[#allocation2 + $0x4] ss:$16 sps:$4 sm:$0xff]   ;;  %v1609_v13 = vld [vmem:[#allocation2 + $0xc] ss:$16 sps:$4 sm:$0xff]   ;;  %v1590_v16 = vld [vmem:[#allocation5 + $0xe0] ss:$8 sps:$4 sm:$0xff]  }
  0x51   :  { %1040 = vmatpush1.bf16.msra.mxu0 %v1537_v23  ;;  %959 = vmatprep.subr.bf16.mxu1 %v1538_v24  ;;  %v289_v5 = vpack.c.bf16 %v241_v63, %v241_v63  ;;  %v1603_v12 = vld [vmem:[#allocation2 + $0x24] ss:$16 sps:$4 sm:$0xff]   ;;  %v1612_v14 = vld [vmem:[#allocation2 + $0x2c] ss:$16 sps:$4 sm:$0xff]   ;;  %v1591_v17 = vld [vmem:[#allocation5 + $0x2e0] ss:$8 sps:$4 sm:$0xff]   ;;  %v1898_v20 = vrot.slane %v1600_v10, %v217_v53  ;;  %v1902_v22 = vrot.slane %v1609_v13, %v217_v53 }
  0x52   :  { %1041 = vmatprep.subr.bf16.mxu0 %v1540_v25  ;;  %v277_v11 = vcombine.high %v254_v6, %v268_v7  ;;  %v1594_v19 = vld [vmem:[#allocation5 + $0x2f4] ss:$8 sps:$4 sm:$0xff]   ;;  %v1900_v21 = vrot.slane %v1603_v12, %v217_v53  ;;  %v1904_v23 = vrot.slane %v1612_v14, %v217_v53  ;;  %v1596_v24 = vld [vmem:[#allocation5 + $0xf0] ss:$8 sps:$4 sm:$0xff]   ;;  %v1625_v45 = vld [vmem:[#allocation5 + $0x320] ss:$8 sps:$4 sm:$0xff]  }
  0x53   :  { %979 = vmatprep.mubr.bf16.mxu1 %v289_v5  ;;  %v1597_v25 = vld [vmem:[#allocation5 + $0x2f0] ss:$8 sps:$4 sm:$0xff]   ;;  %v1634_v53 = vld [vmem:[#allocation5 + $0x140] ss:$8 sps:$4 sm:$0xff]   ;;  %v1642_v55 = vld [vmem:[#allocation5 + $0x154] ss:$8 sps:$4 sm:$0xff]  }
  0x54   :  { %960 = vmatpush1.bf16.msra.mxu1 %v1542_v26  ;;  %v293_v15 = vpack.c.bf16 %v277_v11, %v277_v11  ;;  %v240_v26 = vcombine.low %v218_v60, %v232_v61  ;;  %v1616_v40 = vld [vmem:[#allocation5 + $0x110] ss:$8 sps:$4 sm:$0xff]   ;;  %v1645_v56 = vld [vmem:[#allocation5 + $0x354] ss:$8 sps:$4 sm:$0xff]   ;;  %v1651_v60 = vld [vmem:[#allocation5 + $0x364] ss:$8 sps:$4 sm:$0xff]  }
  0x55   :  { %1042 = vmatpush1.bf16.msra.mxu0 %v1543_v27  ;;  %961 = vmatprep.subr.bf16.mxu1 %v1544_v28  ;;  %v276_v27 = vcombine.low %v254_v6, %v268_v7  ;;  %v1606_v28 = vld [vmem:[#allocation5 + $0x104] ss:$8 sps:$4 sm:$0xff]   ;;  %v1646_v61 = vld [vmem:[#allocation5 + $0x160] ss:$8 sps:$4 sm:$0xff]   ;;  %v1654_v63 = vld [vmem:[#allocation5 + $0x174] ss:$8 sps:$4 sm:$0xff]  }
  0x56   :  { %1043 = vmatprep.subr.bf16.mxu0 %v1546_v29  ;;  %1061 = vmatprep.mubr.bf16.mxu0 %v293_v15  ;;  %v1615_v29 = vld [vmem:[#allocation5 + $0x304] ss:$8 sps:$4 sm:$0xff]   ;;  %v1657_v0 = vld [vmem:[#allocation5 + $0x374] ss:$8 sps:$4 sm:$0xff]   ;;  %v1652_v1 = vld [vmem:[#allocation5 + $0x170] ss:$8 sps:$4 sm:$0xff]  }
  0x57   :  { %v1658_v5 = vld [vmem:[#allocation5 + $0x180] ss:$8 sps:$4 sm:$0xff]   ;;  %v1666_v7 = vld [vmem:[#allocation5 + $0x194] ss:$8 sps:$4 sm:$0xff]   ;;  %v1667_v10 = vld [vmem:[#allocation5 + $0x390] ss:$8 sps:$4 sm:$0xff]  }
  0x58   :  { %962 = vmatpush1.bf16.msra.mxu1 %v1548_v30  ;;  %v243_v30 = vcombine.high %v1898_v20, %v1900_v21  ;;  %v1661_v6 = vld [vmem:[#allocation5 + $0x380] ss:$8 sps:$4 sm:$0xff]   ;;  %v1672_v11 = vld [vmem:[#allocation5 + $0x1a4] ss:$8 sps:$4 sm:$0xff]   ;;  %v1678_v15 = vld [vmem:[#allocation5 + $0x1b4] ss:$8 sps:$4 sm:$0xff]  }
  0x59   :  { %1044 = vmatpush1.bf16.msra.mxu0 %v1549_v31  ;;  %963 = vmatprep.subr.bf16.mxu1 %v1550_v32  ;;  %v279_v31 = vcombine.high %v1902_v22, %v1904_v23  ;;  %v1604_v32 = vld [vmem:[#allocation5 + $0x100] ss:$8 sps:$4 sm:$0xff]   ;;  %v1675_v12 = vld [vmem:[#allocation5 + $0x3a4] ss:$8 sps:$4 sm:$0xff]  }
  0x5a   :  { %1045 = vmatprep.subr.bf16.mxu0 %v1552_v33  ;;  %v1613_v33 = vld [vmem:[#allocation5 + $0x300] ss:$8 sps:$4 sm:$0xff]   ;;  %v291_v38 = vpack.c.bf16 %v243_v30, %v243_v30  ;;  %v1691_v30 = vld [vmem:[#allocation5 + $0x3d0] ss:$8 sps:$4 sm:$0xff]  }
  0x5b   :  { %v295_v39 = vpack.c.bf16 %v279_v31, %v279_v31  ;;  %v1670_v13 = vld [vmem:[#allocation5 + $0x1a0] ss:$8 sps:$4 sm:$0xff]   ;;  %v1696_v31 = vld [vmem:[#allocation5 + $0x1e4] ss:$8 sps:$4 sm:$0xff]  }
  0x5c   :  { %964 = vmatpush1.bf16.msra.mxu1 %v1554_v34  ;;  %v288_v34 = vpack.c.bf16 %v240_v26, %v240_v26  ;;  %v1673_v14 = vld [vmem:[#allocation5 + $0x3a0] ss:$8 sps:$4 sm:$0xff]  }
  0x5d   :  { %1046 = vmatpush1.bf16.msra.mxu0 %v1555_v35  ;;  %965 = vmatprep.subr.bf16.mxu1 %v1556_v36  ;;  %v292_v35 = vpack.c.bf16 %v276_v27, %v276_v27  ;;  %v1618_v36 = vld [vmem:[#allocation5 + $0x114] ss:$8 sps:$4 sm:$0xff]   ;;  %v1685_v26 = vld [vmem:[#allocation5 + $0x3c0] ss:$8 sps:$4 sm:$0xff]  }
  0x5e   :  { %1047 = vmatprep.subr.bf16.mxu0 %v1558_v37  ;;  %v1621_v37 = vld [vmem:[#allocation5 + $0x314] ss:$8 sps:$4 sm:$0xff]  }
  0x5f   :  { %v1690_v27 = vld [vmem:[#allocation5 + $0x1d4] ss:$8 sps:$4 sm:$0xff]  }
  0x60   :  { %966 = vmatpush1.bf16.msra.mxu1 %v1560_v41  ;;  %v1619_v41 = vld [vmem:[#allocation5 + $0x310] ss:$8 sps:$4 sm:$0xff]  }
  0x61   :  { %1048 = vmatpush1.bf16.msra.mxu0 %v1561_v42  ;;  %967 = vmatprep.subr.bf16.mxu1 %v1562_v43  ;;  %v1624_v42 = vld [vmem:[#allocation5 + $0x124] ss:$8 sps:$4 sm:$0xff]  }
  0x62   :  { %1049 = vmatprep.subr.bf16.mxu0 %v1564_v44  ;;  %v1627_v43 = vld [vmem:[#allocation5 + $0x324] ss:$8 sps:$4 sm:$0xff]   ;;  %v1622_v44 = vld [vmem:[#allocation5 + $0x120] ss:$8 sps:$4 sm:$0xff]  }
  0x64   :  { %968 = vmatpush1.bf16.msra.mxu1 %v1566_v47  ;;  %v1630_v47 = vld [vmem:[#allocation5 + $0x134] ss:$8 sps:$4 sm:$0xff]  }
  0x65   :  { %1050 = vmatpush1.bf16.msra.mxu0 %v1567_v48  ;;  %969 = vmatprep.subr.bf16.mxu1 %v1568_v49  ;;  %v1633_v48 = vld [vmem:[#allocation5 + $0x334] ss:$8 sps:$4 sm:$0xff]   ;;  %v1628_v49 = vld [vmem:[#allocation5 + $0x130] ss:$8 sps:$4 sm:$0xff]  }
  0x66   :  { %1051 = vmatprep.subr.bf16.mxu0 %v1570_v50  ;;  %v1631_v50 = vld [vmem:[#allocation5 + $0x330] ss:$8 sps:$4 sm:$0xff]  }
  0x68   :  { %970 = vmatpush1.bf16.msra.mxu1 %v1572_v51  ;;  %v1636_v51 = vld [vmem:[#allocation5 + $0x144] ss:$8 sps:$4 sm:$0xff]  }
  0x69   :  { %1052 = vmatpush1.bf16.msra.mxu0 %v1573_v52  ;;  %971 = vmatprep.subr.bf16.mxu1 %v1574_v54  ;;  %v1639_v52 = vld [vmem:[#allocation5 + $0x344] ss:$8 sps:$4 sm:$0xff]   ;;  %v1637_v54 = vld [vmem:[#allocation5 + $0x340] ss:$8 sps:$4 sm:$0xff]  }
  0x6a   :  { %1053 = vmatprep.subr.bf16.mxu0 %v1576_v57  ;;  %v1640_v57 = vld [vmem:[#allocation5 + $0x150] ss:$8 sps:$4 sm:$0xff]  }
  0x6c   :  { %972 = vmatpush1.bf16.msra.mxu1 %v1578_v58  ;;  %v1643_v58 = vld [vmem:[#allocation5 + $0x350] ss:$8 sps:$4 sm:$0xff]  }
  0x6d   :  { %1054 = vmatpush1.bf16.msra.mxu0 %v1579_v59  ;;  %973 = vmatprep.subr.bf16.mxu1 %v1580_v62  ;;  %v1648_v59 = vld [vmem:[#allocation5 + $0x164] ss:$8 sps:$4 sm:$0xff]   ;;  %v1649_v62 = vld [vmem:[#allocation5 + $0x360] ss:$8 sps:$4 sm:$0xff]  }
  0x6e   :  { %1055 = vmatprep.subr.bf16.mxu0 %v1582_v2  ;;  %v1655_v2 = vld [vmem:[#allocation5 + $0x370] ss:$8 sps:$4 sm:$0xff]  }
  0x70   :  { %974 = vmatpush1.bf16.msra.mxu1 %v1584_v3  ;;  %v1660_v3 = vld [vmem:[#allocation5 + $0x184] ss:$8 sps:$4 sm:$0xff]  }
  0x71   :  { %1056 = vmatpush1.bf16.msra.mxu0 %v1585_v4  ;;  %975 = vmatprep.subr.bf16.mxu1 %v1586_v8  ;;  %v1663_v4 = vld [vmem:[#allocation5 + $0x384] ss:$8 sps:$4 sm:$0xff]   ;;  %v1669_v8 = vld [vmem:[#allocation5 + $0x394] ss:$8 sps:$4 sm:$0xff]  }
  0x72   :  { %1057 = vmatprep.subr.bf16.mxu0 %v1588_v9  ;;  %v1664_v9 = vld [vmem:[#allocation5 + $0x190] ss:$8 sps:$4 sm:$0xff]  }
  0x74   :  { %976 = vmatpush1.bf16.msra.mxu1 %v1590_v16  ;;  %v1681_v16 = vld [vmem:[#allocation5 + $0x3b4] ss:$8 sps:$4 sm:$0xff]  }
  0x75   :  { %1058 = vmatpush1.bf16.msra.mxu0 %v1591_v17  ;;  %977 = vmatprep.subr.bf16.mxu1 %v1592_v18  ;;  %v1676_v17 = vld [vmem:[#allocation5 + $0x1b0] ss:$8 sps:$4 sm:$0xff]  }
  0x76   :  { %1059 = vmatprep.subr.bf16.mxu0 %v1594_v19  ;;  %v1679_v18 = vld [vmem:[#allocation5 + $0x3b0] ss:$8 sps:$4 sm:$0xff]   ;;  %v1684_v19 = vld [vmem:[#allocation5 + $0x1c4] ss:$8 sps:$4 sm:$0xff]  }
  0x78   :  { %978 = vmatpush1.bf16.msra.mxu1 %v1596_v24  ;;  %v1687_v24 = vld [vmem:[#allocation5 + $0x3c4] ss:$8 sps:$4 sm:$0xff]  }
  0x79   :  { %1060 = vmatpush1.bf16.msra.mxu0 %v1597_v25  ;;  %988 = vmatprep.subr.bf16.mxu1 %v1606_v28  ;;  %v1682_v25 = vld [vmem:[#allocation5 + $0x1c0] ss:$8 sps:$4 sm:$0xff]   ;;  %v1693_v28 = vld [vmem:[#allocation5 + $0x3d4] ss:$8 sps:$4 sm:$0xff]  }
  0x7a   :  { %1070 = vmatprep.subr.bf16.mxu0 %v1615_v29  ;;  %v1688_v29 = vld [vmem:[#allocation5 + $0x1d0] ss:$8 sps:$4 sm:$0xff]  }
  0x7b   :  { %980 = vmatmul.mubr.bf16.vlgmr.msra.gmra.mrb[0].mxu1 %v288_v34  ;;  %v1697_v34 = vld [vmem:[#allocation5 + $0x3e0] ss:$8 sps:$4 sm:$0xff]  }
  0x7c   :  { %1062 = vmatmul.mubr.bf16.vlgmr.msra.gmra.mrb[0].mxu0 %v292_v35  ;;  %989 = vmatpush1.bf16.msra.mxu1 %v1604_v32  ;;  %v1699_v32 = vld [vmem:[#allocation5 + $0x3e4] ss:$8 sps:$4 sm:$0xff]   ;;  %v1702_v35 = vld [vmem:[#allocation5 + $0x1f4] ss:$8 sps:$4 sm:$0xff]  }
  0x7d   :  { %1071 = vmatpush1.bf16.msra.mxu0 %v1613_v33  ;;  %990 = vmatprep.subr.bf16.mxu1 %v1618_v36  ;;  %v1694_v33 = vld [vmem:[#allocation5 + $0x1e0] ss:$8 sps:$4 sm:$0xff]   ;;  %v1705_v36 = vld [vmem:[#allocation5 + $0x3f4] ss:$8 sps:$4 sm:$0xff]  }
  0x7e   :  { %1072 = vmatprep.subr.bf16.mxu0 %v1621_v37  ;;  %1020 = vmatprep.mubr.bf16.mxu1 %v291_v38  ;;  %v242_v37 = vcombine.low %v1898_v20, %v1900_v21  ;;  %v278_v38 = vcombine.low %v1902_v22, %v1904_v23  ;;  %v1709_v20 = vld [vmem:[#allocation7 + $0x8] sm:$0xff]   ;;  %v1710_v21 = vld [vmem:[#allocation7 + $0x50] sm:$0xff]   ;;  %v1712_v23 = vld [vmem:[#allocation7 + $0x58] sm:$0xff]  }
  0x7f   :  { %1102 = vmatprep.mubr.bf16.mxu0 %v295_v39  ;;  %v1700_v39 = vld [vmem:[#allocation5 + $0x1f0] ss:$8 sps:$4 sm:$0xff]  }
  0x80   :  { %991 = vmatpush1.bf16.msra.mxu1 %v1616_v40  ;;  %v1703_v40 = vld [vmem:[#allocation5 + $0x3f0] ss:$8 sps:$4 sm:$0xff]  }
  0x81   :  { %1073 = vmatpush1.bf16.msra.mxu0 %v1619_v41  ;;  %992 = vmatprep.subr.bf16.mxu1 %v1624_v42  ;;  %v1706_v41 = vld [vmem:[#allocation7 + $0x40] sm:$0xff]   ;;  %v290_v42 = vpack.c.bf16 %v242_v37, %v242_v37  ;;  %v1711_v22 = vld [vmem:[#allocation7 + $0x10] sm:$0xff]  }
  0x82   :  { %1074 = vmatprep.subr.bf16.mxu0 %v1627_v43  ;;  %v294_v43 = vpack.c.bf16 %v278_v38, %v278_v38 }
  0x84   :  { %993 = vmatpush1.bf16.msra.mxu1 %v1622_v44  ;;  %v1707_v44 = vld [vmem:[#allocation7] sm:$0xff]  }
  0x85   :  { %1075 = vmatpush1.bf16.msra.mxu0 %v1625_v45  ;;  %994 = vmatprep.subr.bf16.mxu1 %v1630_v47  ;;  %v1708_v45 = vld [vmem:[#allocation7 + $0x48] sm:$0xff]   ;;  %v1713_v47 = vld [vmem:[#allocation7 + $0x18] sm:$0xff]  }
  0x86   :  { %1076 = vmatprep.subr.bf16.mxu0 %v1633_v48  ;;  %v1714_v48 = vld [vmem:[#allocation7 + $0x60] sm:$0xff]  }
  0x88   :  { %995 = vmatpush1.bf16.msra.mxu1 %v1628_v49  ;;  %v1715_v49 = vld [vmem:[#allocation7 + $0x20] sm:$0xff]  }
  0x89   :  { %1077 = vmatpush1.bf16.msra.mxu0 %v1631_v50  ;;  %996 = vmatprep.subr.bf16.mxu1 %v1636_v51  ;;  %v1716_v50 = vld [vmem:[#allocation7 + $0x68] sm:$0xff]  }
  0x8a   :  { %1078 = vmatprep.subr.bf16.mxu0 %v1639_v52  ;;  %v1717_v51 = vld [vmem:[#allocation7 + $0x28] sm:$0xff]   ;;  %v1718_v52 = vld [vmem:[#allocation7 + $0x70] sm:$0xff]  }
  0x8c   :  { %997 = vmatpush1.bf16.msra.mxu1 %v1634_v53  ;;  %v1719_v53 = vld [vmem:[#allocation7 + $0x30] sm:$0xff]  }
  0x8d   :  { %1079 = vmatpush1.bf16.msra.mxu0 %v1637_v54  ;;  %998 = vmatprep.subr.bf16.mxu1 %v1642_v55  ;;  %v1720_v54 = vld [vmem:[#allocation7 + $0x78] sm:$0xff]  }
  0x8e   :  { %1080 = vmatprep.subr.bf16.mxu0 %v1645_v56  ;;  %v1721_v55 = vld [vmem:[#allocation7 + $0x38] sm:$0xff]   ;;  %v299_v56 = vsub.s32 0, %v1895_v46 }
  0x90   :  { %999 = vmatpush1.bf16.msra.mxu1 %v1640_v57  ;;  %v199_v57 = vld [vmem:[%s1936_s2] sm:$0x3] }
  0x91   :  { %1081 = vmatpush1.bf16.msra.mxu0 %v1643_v58  ;;  %1000 = vmatprep.subr.bf16.mxu1 %v1648_v59  ;;  %v303_v58 = vsub.s32 1, %v1895_v46  ;;  %v300_v59 = vrot.slane %v199_v57, %v299_v56 }
  0x92   :  { %1082 = vmatprep.subr.bf16.mxu0 %v1651_v60 }
  0x93   :  { %v304_v60 = vrot.slane %v199_v57, %v303_v58 }
  0x94   :  { %1001 = vmatpush1.bf16.msra.mxu1 %v1646_v61 }
  0x95   :  { %1083 = vmatpush1.bf16.msra.mxu0 %v1649_v62  ;;  %1002 = vmatprep.subr.bf16.mxu1 %v1654_v63 }
  0x96   :  { %1084 = vmatprep.subr.bf16.mxu0 %v1657_v0 }
  0x98   :  { %1003 = vmatpush1.bf16.msra.mxu1 %v1652_v1 }
  0x99   :  { %1085 = vmatpush1.bf16.msra.mxu0 %v1655_v2  ;;  %1004 = vmatprep.subr.bf16.mxu1 %v1660_v3 }
  0x9a   :  { %1086 = vmatprep.subr.bf16.mxu0 %v1663_v4 }
  0x9c   :  { %1005 = vmatpush1.bf16.msra.mxu1 %v1658_v5 }
  0x9d   :  { %1087 = vmatpush1.bf16.msra.mxu0 %v1661_v6  ;;  %1006 = vmatprep.subr.bf16.mxu1 %v1666_v7 }
  0x9e   :  { %1088 = vmatprep.subr.bf16.mxu0 %v1669_v8 }
  0xa0   :  { %1007 = vmatpush1.bf16.msra.mxu1 %v1664_v9 }
  0xa1   :  { %1089 = vmatpush1.bf16.msra.mxu0 %v1667_v10  ;;  %1008 = vmatprep.subr.bf16.mxu1 %v1672_v11 }
  0xa2   :  { %1090 = vmatprep.subr.bf16.mxu0 %v1675_v12 }
  0xa4   :  { %1009 = vmatpush1.bf16.msra.mxu1 %v1670_v13  ;;  %v1438_v13 = vld [vmem:[%s1938_s4] ss:$0 sm:$0xff] }
  0xa5   :  { %1091 = vmatpush1.bf16.msra.mxu0 %v1673_v14  ;;  %1010 = vmatprep.subr.bf16.mxu1 %v1678_v15 }
  0xa6   :  { %1092 = vmatprep.subr.bf16.mxu0 %v1681_v16 }
  0xa8   :  { %1011 = vmatpush1.bf16.msra.mxu1 %v1676_v17 }
  0xa9   :  { %1093 = vmatpush1.bf16.msra.mxu0 %v1679_v18  ;;  %1012 = vmatprep.subr.bf16.mxu1 %v1684_v19 }
  0xaa   :  { %1094 = vmatprep.subr.bf16.mxu0 %v1687_v24 }
  0xac   :  { %1013 = vmatpush1.bf16.msra.mxu1 %v1682_v25 }
  0xad   :  { %1095 = vmatpush1.bf16.msra.mxu0 %v1685_v26  ;;  %1014 = vmatprep.subr.bf16.mxu1 %v1690_v27 }
  0xae   :  { %1096 = vmatprep.subr.bf16.mxu0 %v1693_v28 }
  0xb0   :  { %1015 = vmatpush1.bf16.msra.mxu1 %v1688_v29 }
  0xb1   :  { %1097 = vmatpush1.bf16.msra.mxu0 %v1691_v30  ;;  %1016 = vmatprep.subr.bf16.mxu1 %v1696_v31 }
  0xb2   :  { %1098 = vmatprep.subr.bf16.mxu0 %v1699_v32 }
  0xb4   :  { %1017 = vmatpush1.bf16.msra.mxu1 %v1694_v33 }
  0xb5   :  { %1099 = vmatpush1.bf16.msra.mxu0 %v1697_v34  ;;  %1018 = vmatprep.subr.bf16.mxu1 %v1702_v35 }
  0xb6   :  { %1100 = vmatprep.subr.bf16.mxu0 %v1705_v36 }
  0xb8   :  { %1019 = vmatpush1.bf16.msra.mxu1 %v1700_v39 }
  0xb9   :  { %1101 = vmatpush1.bf16.msra.mxu0 %v1703_v40  ;;  %1455 = vmatprep.subr.bf16.mxu1 %v1706_v41 }
  0xbb   :  { %1021 = vmatmul.mubr.bf16.vlgmr.msra.gmra.mrb[0].mxu1 %v290_v42 }
  0xbc   :  { %1103 = vmatmul.mubr.bf16.vlgmr.msra.gmra.mrb[0].mxu0 %v294_v43  ;;  %1456 = vmatpush3.bf16.msra.mxu1 %v1707_v44 }
  0xbd   :  { %1457 = vmatprep.subr.bf16.mxu1 %v1708_v45 }
  0xc0   :  { %1458 = vmatpush3.bf16.msra.mxu1 %v1709_v20 }
  0xc1   :  { %1459 = vmatprep.subr.bf16.mxu1 %v1710_v21 }
  0xc4   :  { %1460 = vmatpush3.bf16.msra.mxu1 %v1711_v22 }
  0xc5   :  { %1461 = vmatprep.subr.bf16.mxu1 %v1712_v23 }
  0xc8   :  { %1462 = vmatpush3.bf16.msra.mxu1 %v1713_v47 }
  0xc9   :  { %1463 = vmatprep.subr.bf16.mxu1 %v1714_v48 }
  0xcc   :  { %1464 = vmatpush3.bf16.msra.mxu1 %v1715_v49 }
  0xcd   :  { %1465 = vmatprep.subr.bf16.mxu1 %v1716_v50 }
  0xd0   :  { %1466 = vmatpush3.bf16.msra.mxu1 %v1717_v51 }
  0xd1   :  { %1467 = vmatprep.subr.bf16.mxu1 %v1718_v52 }
  0xd4   :  { %1468 = vmatpush3.bf16.msra.mxu1 %v1719_v53 }
  0xd5   :  { %1469 = vmatprep.subr.bf16.mxu1 %v1720_v54 }
  0xd8   :  { %1470 = vmatpush3.bf16.msra.mxu1 %v1721_v55 }
 0x18e   :  { %v1022_v61 = vpop.f32.mrb[0].mxu1 }
 0x18f   :  { %v1104_v62 = vpop.f32.mrb[0].mxu0  ;;  %v1477_v63 = vadd.f32 %v1022_v61, %v300_v59  ;;  %v1024_v0 = vpop.f32.mrb[1].mxu1 }
 0x190   :  { %v1106_v1 = vpop.f32.mrb[1].mxu0  ;;  %v1479_v2 = vadd.f32 %v1024_v0, %v304_v60  ;;  %v1026_v3 = vpop.f32.mrb[2].mxu1 }
 0x191   :  { %v1108_v4 = vpop.f32.mrb[2].mxu0  ;;  %v1478_v5 = vadd.f32 %v1477_v63, %v1104_v62  ;;  %v1027_v6 = vpop.f32.mrb[3].mxu1 }
 0x192   :  { %v1109_v7 = vpop.f32.mrb[3].mxu0  ;;  %v1480_v8 = vadd.f32 %v1479_v2, %v1106_v1 }
 0x193   :  { %v1111_v9 = vmax.f32 %v1478_v5, 0.0 }
 0x194   :  { %v1112_v10 = vmax.f32 %v1480_v8, 0.0 }
 0x195   :  { %v1146_v12 = vpack.c.bf16 %v1111_v9, %v1111_v9 }
 0x196   :  { %v1147_v11 = vpack.c.bf16 %v1112_v10, %v1112_v10 }
 0x198   :  { %1282 = vmatprep.mubr.bf16.mxu1 %v1147_v11 }
 0x199   :  { %1283 = vmatmul.mubr.bf16.vlgmr.msra.gmra.mrb[4].mxu1 %v1146_v12 }
 0x26c   :  { %v1471_v46 = vpop.f32.mrb[4].mxu1 }
 0x26d   :  { %v1472_v14 = vpop.f32.mrb[5].mxu1 }
 0x26e   :  { %v1473_v15 = vadd.f32 %v1472_v14, %v1471_v46  ;;  %v1474_v16 = vpop.f32.mrb[6].mxu1 }
 0x26f   :  { %v1475_v17 = vpop.f32.mrb[7].mxu1 }
 0x270   :  { %v1285_v18 = vadd.f32 %v1473_v15, %v1438_v13 }
 0x272   :  { %v1290_v19 = vmax.f32 %v1285_v18, 0.0 }
 0x274   :  { %1291 = vst [vmem:[#allocation8] sm:$0xff] %v1290_v19 }
 0x275   :  { %1296 = vsyncadd [#allocation4], 96  ;;  %s1826_s11 = smov [#allocation8]  }
 0x276   :  { %s1297_s12 = sshll.u32 %s1826_s11, 4  ;;  %s1298_s12 = int_to_ptr.vmem [resolvable:$true] %s1297_s12 }
 0x277   :  { %s1788_s13 = scalar_lea.vmem %s1298_s12, 32  ;;  %s1792_s14 = scalar_lea.vmem %s1298_s12, 128 }
 0x278   :  { %p1789_p10 = scmp.ne.s32.totalorder %s1298_s12, %s1788_s13  ;;  %p1793_p11 = scmp.lt.s32.totalorder %s1298_s12, %s1298_s12 }
 0x279   :  { %p1794_p12 = scmp.lt.s32.totalorder %s1792_s14, %s1788_s13 }
 0x27b   :  { %p1795_p13 = por %p1794_p12, %p1793_p11 }
 0x27d   :  { %p1796_p0 = pnand %p1795_p13, %p1789_p10 }
 0x27f   :  { %1799 = shalt.err (!%p1796_p0)
}
 0x280   :  { %s1800_s16 = scalar_lea.hbm %s1939_s5, 32 }
 0x281   :  { %p1801_p1 = scmp.ne.s32.totalorder %s1939_s5, %s1800_s16  ;;  %p1804_p2 = scmp.lt.u32.totalorder %s1800_s16, %s1939_s5 }
 0x283   :  { %p1806_p3 = pnand %p1804_p2, %p1801_p1 }
 0x285   :  { %1809 = shalt.err (!%p1806_p3)
}
 0x286   :  { %s1827_s20 = smov 32   ;;  %s1828_s21 = smov 2  }
 0x287   :  { %1303 = dma.vmem_to_hbm [thread:$0]  %s1298_s12, 32, %s1939_s5, [#allocation4], %s1827_s20, %s1827_s20, %s1828_s21  }
 0x288   :  { %1814 = dma.done.wait [#allocation4], 128  }
 0x289   :  { %1815 = vsyncadd [#allocation4], 4294967168 }
 0x28a   :  { %1307 = vsyncpa [#allocation3], 1 }
 0x28b   :  { %1308 = vsyncpa [#allocation6], 1 }
 0x28c   :  { %1309 = vsyncpa [#allocation4], 1 }

</bundles_post_ra>
